<compile_context>
chip_gen: v6e
topology: v6e:2x2x1
jax: 0.10.0
libtpu: 0.0.40
codegen_flags: <defaults>
</compile_context>

<pallas_src>
import jax
import jax.numpy as jnp
from jax.experimental import pallas as pl
from jax.experimental.pallas import tpu as pltpu

# ----- small synthetic config (module default hidden_size=768 shrunk to 128) -----
VOCAB = 64
BATCH = 2
SEQ = 8
HIDDEN = 128
NUM_HEADS = 2
HEAD_DIM = HIDDEN // NUM_HEADS
INTERMEDIATE = 256
NUM_LAYERS = 2
NUM_CLASSES = 7
CLS_PAD = 128            # lane-dense padded classifier width
LN_EPS = 1e-12
TOKENS = BATCH * SEQ

# Packed per-layer vector layout (all offsets are multiples of 128 -> lane-aligned slices)
_VEC_SLOTS = (
    ("bqkv", 3 * HIDDEN),
    ("bo", HIDDEN),
    ("ln1_g", HIDDEN),
    ("ln1_b", HIDDEN),
    ("b1", INTERMEDIATE),
    ("b2", HIDDEN),
    ("ln2_g", HIDDEN),
    ("ln2_b", HIDDEN),
)
_VEC_OFF = {}
_o = 0
for _name, _w in _VEC_SLOTS:
    _VEC_OFF[_name] = (_o, _o + _w)
    _o += _w
VEC_WIDTH = _o                                   # 1408 (multiple of 128)

# Packed per-layer HIDDEN-row weight layout: [wqkv | wo | w1] along lanes
WQKV_OFF = 0
WO_OFF = 3 * HIDDEN                               # 384
W1_OFF = 4 * HIDDEN                               # 512
WH_WIDTH = 4 * HIDDEN + INTERMEDIATE              # 768


def _layer_norm(x, gamma, beta):
    mu = jnp.mean(x, axis=-1, keepdims=True)
    var = jnp.mean(jnp.square(x - mu), axis=-1, keepdims=True)
    return (x - mu) * jax.lax.rsqrt(var + LN_EPS) * gamma + beta


# --------------------------------------------------------------------------------
# Single fused kernel: embedding LN + NUM_LAYERS encoder layers + pooler + classifier
# Grid axis = layer index; per-layer weights stream in, hidden state stays in VMEM.
# --------------------------------------------------------------------------------
def bert_kernel(x_emb_ref, bias_ref, emb_g_ref, emb_b_ref,
                wh_ref, w2_ref, vec_ref,
                pw_ref, pb_ref, cw_ref, cb_ref,
                logits_ref, x_scratch):
    layer = pl.program_id(0)

    @pl.when(layer == 0)
    def _():
        # Embedding LayerNorm fused into the first grid step.
        x_scratch[...] = _layer_norm(x_emb_ref[...], emb_g_ref[...], emb_b_ref[...])

    x = x_scratch[...]                           # (B*S, H) f32, resident across layers
    x_bf = x.astype(jnp.bfloat16)

    def v(name):                                 # packed per-layer vector slot (1, width)
        lo, hi = _VEC_OFF[name]
        return vec_ref[:, lo:hi]

    # Fused QKV projection (bf16 matmul, f32 accumulation); softmax scale folded into Q.
    qkv = jnp.dot(x_bf, wh_ref[:, WQKV_OFF:WO_OFF],
                  preferred_element_type=jnp.float32) + v("bqkv")
    scale = 1.0 / (HEAD_DIM ** 0.5)
    q = (qkv[:, 0 * HIDDEN:1 * HIDDEN] * scale).astype(jnp.bfloat16)
    k = qkv[:, 1 * HIDDEN:2 * HIDDEN].astype(jnp.bfloat16)
    val = qkv[:, 2 * HIDDEN:3 * HIDDEN].astype(jnp.bfloat16)

    bias = bias_ref[...]                         # (B*S, B*S): block-diag batch + key-pad mask
    wo = wh_ref[:, WO_OFF:W1_OFF]                # (H, H) bf16

    attn = v("bo")                               # (1, H) f32, broadcast on first accumulate
    for h in range(NUM_HEADS):                   # static unroll; concat-free (wo folded per head)
        sl = slice(h * HEAD_DIM, (h + 1) * HEAD_DIM)
        s = jax.lax.dot_general(q[:, sl], k[:, sl], (((1,), (1,)), ((), ())),
                                preferred_element_type=jnp.float32) + bias
        m = jnp.max(s, axis=-1, keepdims=True)
        e = jnp.exp(s - m)
        p = e * pl.reciprocal(jnp.sum(e, axis=-1, keepdims=True), approx=True)
        ctx = jnp.dot(p.astype(jnp.bfloat16), val[:, sl],
                      preferred_element_type=jnp.float32)
        attn = attn + jnp.dot(ctx.astype(jnp.bfloat16), wo[sl, :],
                              preferred_element_type=jnp.float32)

    h1 = _layer_norm(x + attn, v("ln1_g"), v("ln1_b"))

    ff = jnp.dot(h1.astype(jnp.bfloat16), wh_ref[:, W1_OFF:WH_WIDTH],
                 preferred_element_type=jnp.float32) + v("b1")
    # TODO(synk): tanh-approx GELU (HF/PyTorch BERT default is erf GELU; ~1e-3 logit diff).
    ff = jax.nn.gelu(ff, approximate=True)
    ff = jnp.dot(ff.astype(jnp.bfloat16), w2_ref[...],
                 preferred_element_type=jnp.float32) + v("b2")
    h2 = _layer_norm(h1 + ff, v("ln2_g"), v("ln2_b"))

    x_scratch[...] = h2

    @pl.when(layer == NUM_LAYERS - 1)
    def _():
        # Pooler reads the [CLS] row of each batch element (rows b*SEQ).
        cls = jnp.concatenate([h2[b * SEQ:b * SEQ + 1, :] for b in range(BATCH)], axis=0)
        pooled = jnp.tanh(jnp.dot(cls.astype(jnp.bfloat16), pw_ref[...],
                                  preferred_element_type=jnp.float32) + pb_ref[...])
        # TODO(synk): nn.Dropout(p=0.5) is an inference-mode identity (no train-mode RNG parity).
        logits_ref[...] = (jnp.dot(pooled.astype(jnp.bfloat16), cw_ref[...],
                                   preferred_element_type=jnp.float32) + cb_ref[...])


def _stacked_spec(*tail):
    # Per-layer stacked weight: leading layer dim squeezed out, streamed by grid index.
    n = len(tail)
    return pl.BlockSpec((None,) + tuple(tail), lambda l, _n=n: (l,) + (0,) * _n)


def _const_spec(*shape):
    # Whole-array block, constant index map (fetched once, revisited across layers).
    n = len(shape)
    return pl.BlockSpec(tuple(shape), lambda l, _n=n: (0,) * _n)


def _fused_bert_call(x_emb, attn_bias, p):
    in_specs = [
        _const_spec(TOKENS, HIDDEN),                                  # x_emb
        _const_spec(TOKENS, TOKENS),                                  # attention bias
        _const_spec(1, HIDDEN), _const_spec(1, HIDDEN),               # emb LN gamma/beta
        _stacked_spec(HIDDEN, WH_WIDTH),                              # packed [wqkv|wo|w1]
        _stacked_spec(INTERMEDIATE, HIDDEN),                          # w2
        _stacked_spec(1, VEC_WIDTH),                                  # packed bias/LN vectors
        _const_spec(HIDDEN, HIDDEN), _const_spec(1, HIDDEN),          # pooler
        _const_spec(HIDDEN, CLS_PAD), _const_spec(1, CLS_PAD),        # classifier (padded)
    ]
    out_spec = pl.BlockSpec((BATCH, CLS_PAD), lambda l: (0, 0))

    return pl.pallas_call(
        bert_kernel,
        out_shape=jax.ShapeDtypeStruct((BATCH, CLS_PAD), jnp.float32),
        grid_spec=pltpu.PrefetchScalarGridSpec(
            num_scalar_prefetch=0,
            grid=(NUM_LAYERS,),
            in_specs=in_specs,
            out_specs=out_spec,
            scratch_shapes=[pltpu.VMEM((TOKENS, HIDDEN), jnp.float32)],
        ),
        compiler_params=pltpu.CompilerParams(dimension_semantics=("arbitrary",)),
    )(x_emb, attn_bias,
      p["emb_ln_g"], p["emb_ln_b"],
      p["wh"], p["w2"], p["layer_vec"],
      p["pooler_w"], p["pooler_b"], p["cls_w"], p["cls_b"])


# --------------------------------------------------------------------------------
# Parameter init + forward (embedding gather / mask-bias construction stay in JAX)
# --------------------------------------------------------------------------------
def init_params(key):
    keys = iter(jax.random.split(key, 64))

    def w(shape, dtype=jnp.bfloat16, scale=0.02):
        return (jax.random.normal(next(keys), shape, jnp.float32) * scale).astype(dtype)

    def stack(shape, dtype=jnp.bfloat16):
        return jnp.stack([w(shape, dtype) for _ in range(NUM_LAYERS)], axis=0)

    def zeros(d):
        return jnp.zeros((NUM_LAYERS, 1, d), jnp.float32)

    def ones(d):
        return jnp.ones((NUM_LAYERS, 1, d), jnp.float32)

    # stacked per-layer matmul weights (bf16), packed [wqkv | wo | w1] along lanes
    wqkv = stack((HIDDEN, 3 * HIDDEN))
    wo = stack((HIDDEN, HIDDEN))
    w1 = stack((HIDDEN, INTERMEDIATE))
    wh = jnp.concatenate([wqkv, wo, w1], axis=-1)          # (L, 128, 768) bf16
    w2 = stack((INTERMEDIATE, HIDDEN))                      # (L, 256, 128) bf16

    # packed per-layer bias / LayerNorm vector slab (f32), layout matches _VEC_SLOTS
    layer_vec = jnp.concatenate([
        zeros(3 * HIDDEN),    # bqkv
        zeros(HIDDEN),        # bo
        ones(HIDDEN),         # ln1_g
        zeros(HIDDEN),        # ln1_b
        zeros(INTERMEDIATE),  # b1
        zeros(HIDDEN),        # b2
        ones(HIDDEN),         # ln2_g
        zeros(HIDDEN),        # ln2_b
    ], axis=-1)                                             # (L, 1, 1408) f32

    params = {
        "word_emb": w((VOCAB, HIDDEN), jnp.float32),
        "pos_emb": w((SEQ, HIDDEN), jnp.float32),
        "type_emb": w((2, HIDDEN), jnp.float32),
        "emb_ln_g": jnp.ones((1, HIDDEN), jnp.float32),
        "emb_ln_b": jnp.zeros((1, HIDDEN), jnp.float32),
        "wh": wh,
        "w2": w2,
        "layer_vec": layer_vec,
        # pooler + classifier (classifier padded to 128 lanes; extra cols are zero)
        "pooler_w": w((HIDDEN, HIDDEN)),
        "pooler_b": jnp.zeros((1, HIDDEN), jnp.float32),
        "cls_w": jnp.zeros((HIDDEN, CLS_PAD), jnp.bfloat16).at[:, :NUM_CLASSES].set(
            w((HIDDEN, NUM_CLASSES))),
        "cls_b": jnp.zeros((1, CLS_PAD), jnp.float32),
    }
    return params


@jax.jit
def bert_classifier_forward(params, input_ids, attention_mask):
    B, S = input_ids.shape
    # Embeddings (gather is glue; everything downstream runs in one Pallas kernel).
    x = (params["word_emb"][input_ids]
         + params["pos_emb"][jnp.arange(S)][None, :, :]
         + params["type_emb"][0][None, None, :]).astype(jnp.float32)
    x = x.reshape(B * S, HIDDEN)

    # Additive attention bias, computed once and reused by every layer:
    # 0 where (same batch element AND key not padded), -1e9 otherwise.
    batch_id = jnp.arange(B * S) // S
    same_batch = batch_id[:, None] == batch_id[None, :]
    key_valid = attention_mask.reshape(-1) > 0
    attn_bias = jnp.where(same_batch & key_valid[None, :], 0.0, -1e9).astype(jnp.float32)

    logits_padded = _fused_bert_call(x, attn_bias, params)
    return logits_padded[:, :NUM_CLASSES]


if __name__ == "__main__":
    root = jax.random.PRNGKey(0)
    k_params, k_ids = jax.random.split(root)

    params = init_params(k_params)
    input_ids = jax.random.randint(k_ids, (BATCH, SEQ), 0, VOCAB, dtype=jnp.int32)
    attention_mask = jnp.ones((BATCH, SEQ), jnp.int32).at[1, 6:].set(0)  # pad tail of row 1

    logits = bert_classifier_forward(params, input_ids, attention_mask)
    logits = jax.block_until_ready(logits)

    assert logits.shape == (BATCH, NUM_CLASSES)
    assert bool(jnp.all(jnp.isfinite(logits)))
    print("KERNEL_OK")
</pallas_src>

<mosaic_0001>
module attributes {stable_mosaic.version = 11 : i64} {
  func.func @bert_kernel(%arg0: i32, %arg1: memref<16x128xf32, #tpu.memory_space<vmem>>, %arg2: memref<16x16xf32, #tpu.memory_space<vmem>>, %arg3: memref<1x128xf32, #tpu.memory_space<vmem>>, %arg4: memref<1x128xf32, #tpu.memory_space<vmem>>, %arg5: memref<1x128x768xbf16, #tpu.memory_space<vmem>>, %arg6: memref<1x256x128xbf16, #tpu.memory_space<vmem>>, %arg7: memref<1x1x1408xf32, #tpu.memory_space<vmem>>, %arg8: memref<128x128xbf16, #tpu.memory_space<vmem>>, %arg9: memref<1x128xf32, #tpu.memory_space<vmem>>, %arg10: memref<128x128xbf16, #tpu.memory_space<vmem>>, %arg11: memref<1x128xf32, #tpu.memory_space<vmem>>, %arg12: memref<2x128xf32, #tpu.memory_space<vmem>>, %arg13: memref<16x128xf32, #tpu.memory_space<vmem>>) attributes {dimension_semantics = [#tpu.dimension_semantics<arbitrary>], iteration_bounds = array<i64: 2>, scalar_prefetch = 0 : i64, scratch_operands = 1 : i64, tpu.core_type = #tpu.core_type<tc>, window_params = [{pipeline_mode = #tpu.pipeline_mode<synchronous>, transform_indices = @transform_0, window_bounds = array<i64: 16, 128>}, {pipeline_mode = #tpu.pipeline_mode<synchronous>, transform_indices = @transform_1, window_bounds = array<i64: 16, 16>}, {pipeline_mode = #tpu.pipeline_mode<synchronous>, transform_indices = @transform_2, window_bounds = array<i64: 1, 128>}, {pipeline_mode = #tpu.pipeline_mode<synchronous>, transform_indices = @transform_3, window_bounds = array<i64: 1, 128>}, {transform_indices = @transform_4, window_bounds = array<i64: 1, 128, 768>}, {transform_indices = @transform_5, window_bounds = array<i64: 1, 256, 128>}, {transform_indices = @transform_6, window_bounds = array<i64: 1, 1, 1408>}, {pipeline_mode = #tpu.pipeline_mode<synchronous>, transform_indices = @transform_7, window_bounds = array<i64: 128, 128>}, {pipeline_mode = #tpu.pipeline_mode<synchronous>, transform_indices = @transform_8, window_bounds = array<i64: 1, 128>}, {pipeline_mode = #tpu.pipeline_mode<synchronous>, transform_indices = @transform_9, window_bounds = array<i64: 128, 128>}, {pipeline_mode = #tpu.pipeline_mode<synchronous>, transform_indices = @transform_10, window_bounds = array<i64: 1, 128>}, {pipeline_mode = #tpu.pipeline_mode<synchronous>, transform_indices = @transform_11, window_bounds = array<i64: 2, 128>}]} {
    %c0_i32 = arith.constant 0 : i32
    %0 = arith.cmpi eq, %arg0, %c0_i32 : i32
    %1 = arith.extui %0 : i1 to i32
    %c0_i32_0 = arith.constant 0 : i32
    %2 = arith.cmpi ne, %1, %c0_i32_0 : i32
    scf.if %2 {
      %c0_63 = arith.constant 0 : index
      %c0_64 = arith.constant 0 : index
      %155 = vector.load %arg1[%c0_63, %c0_64] : memref<16x128xf32, #tpu.memory_space<vmem>>, vector<16x128xf32>
      %c0_65 = arith.constant 0 : index
      %c0_66 = arith.constant 0 : index
      %156 = vector.load %arg3[%c0_65, %c0_66] : memref<1x128xf32, #tpu.memory_space<vmem>>, vector<1x128xf32>
      %c0_67 = arith.constant 0 : index
      %c0_68 = arith.constant 0 : index
      %157 = vector.load %arg4[%c0_67, %c0_68] : memref<1x128xf32, #tpu.memory_space<vmem>>, vector<1x128xf32>
      %cst_69 = arith.constant dense<0.000000e+00> : vector<16xf32>
      %158 = vector.multi_reduction <add>, %155, %cst_69 [1] : vector<16x128xf32> to vector<16xf32>
      %159 = vector.shape_cast %158 : vector<16xf32> to vector<16x1xf32>
      %cst_70 = arith.constant 1.280000e+02 : f32
      %160 = vector.broadcast %cst_70 : f32 to vector<16x1xf32>
      %161 = arith.divf %159, %160 : vector<16x1xf32>
      %162 = vector.broadcast %161 : vector<16x1xf32> to vector<16x128xf32>
      %163 = arith.subf %155, %162 : vector<16x128xf32>
      %164 = arith.mulf %163, %163 : vector<16x128xf32>
      %cst_71 = arith.constant dense<0.000000e+00> : vector<16xf32>
      %165 = vector.multi_reduction <add>, %164, %cst_71 [1] : vector<16x128xf32> to vector<16xf32>
      %166 = vector.shape_cast %165 : vector<16xf32> to vector<16x1xf32>
      %cst_72 = arith.constant 1.280000e+02 : f32
      %167 = vector.broadcast %cst_72 : f32 to vector<16x1xf32>
      %168 = arith.divf %166, %167 : vector<16x1xf32>
      %169 = vector.broadcast %161 : vector<16x1xf32> to vector<16x128xf32>
      %170 = arith.subf %155, %169 : vector<16x128xf32>
      %cst_73 = arith.constant 9.99999996E-13 : f32
      %171 = vector.broadcast %cst_73 : f32 to vector<16x1xf32>
      %172 = arith.addf %168, %171 : vector<16x1xf32>
      %173 = math.rsqrt %172 : vector<16x1xf32>
      %174 = vector.broadcast %173 : vector<16x1xf32> to vector<16x128xf32>
      %175 = arith.mulf %170, %174 : vector<16x128xf32>
      %176 = vector.broadcast %156 : vector<1x128xf32> to vector<16x128xf32>
      %177 = arith.mulf %175, %176 : vector<16x128xf32>
      %178 = vector.broadcast %157 : vector<1x128xf32> to vector<16x128xf32>
      %179 = arith.addf %177, %178 : vector<16x128xf32>
      %c0_74 = arith.constant 0 : index
      %c0_75 = arith.constant 0 : index
      %180 = vector.load %arg13[%c0_74, %c0_75] : memref<16x128xf32, #tpu.memory_space<vmem>>, vector<16x128xf32>
      tpu.vector_store %arg13[%c0_74, %c0_75], %179 {strides = array<i32>} : memref<16x128xf32, #tpu.memory_space<vmem>>, vector<16x128xf32>,
    } else {
    }
    %c0 = arith.constant 0 : index
    %c0_1 = arith.constant 0 : index
    %3 = vector.load %arg13[%c0, %c0_1] : memref<16x128xf32, #tpu.memory_space<vmem>>, vector<16x128xf32>
    %4 = arith.truncf %3 : vector<16x128xf32> to vector<16x128xbf16>
    %c0_2 = arith.constant 0 : index
    %c0_3 = arith.constant 0 : index
    %c0_4 = arith.constant 0 : index
    %5 = vector.load %arg5[%c0_2, %c0_3, %c0_4] : memref<1x128x768xbf16, #tpu.memory_space<vmem>>, vector<1x128x384xbf16>
    %6 = vector.shape_cast %5 : vector<1x128x384xbf16> to vector<128x384xbf16>
    %cst = arith.constant dense<0.000000e+00> : vector<16x384xf32>
    %7 = tpu.matmul %4, %6, %cst {dimension_numbers = #tpu.dot_dimension_numbers<[1], [0], [0], [1], [0, 0, 1, 1], [], []>} : vector<16x128xbf16>, vector<128x384xbf16>, vector<16x384xf32> -> vector<16x384xf32>
    %c0_5 = arith.constant 0 : index
    %c0_6 = arith.constant 0 : index
    %c0_7 = arith.constant 0 : index
    %8 = vector.load %arg7[%c0_5, %c0_6, %c0_7] : memref<1x1x1408xf32, #tpu.memory_space<vmem>>, vector<1x1x384xf32>
    %9 = vector.shape_cast %8 : vector<1x1x384xf32> to vector<1x384xf32>
    %10 = vector.broadcast %9 : vector<1x384xf32> to vector<16x384xf32>
    %11 = arith.addf %7, %10 : vector<16x384xf32>
    %12 = vector.extract_strided_slice %11 {offsets = [0, 0], sizes = [16, 128], strides = [1, 1]} : vector<16x384xf32> to vector<16x128xf32>
    %cst_8 = arith.constant 1.250000e-01 : f32
    %13 = vector.broadcast %cst_8 : f32 to vector<16x128xf32>
    %14 = arith.mulf %12, %13 : vector<16x128xf32>
    %15 = arith.truncf %14 : vector<16x128xf32> to vector<16x128xbf16>
    %16 = vector.extract_strided_slice %11 {offsets = [0, 128], sizes = [16, 128], strides = [1, 1]} : vector<16x384xf32> to vector<16x128xf32>
    %17 = arith.truncf %16 : vector<16x128xf32> to vector<16x128xbf16>
    %18 = vector.extract_strided_slice %11 {offsets = [0, 256], sizes = [16, 128], strides = [1, 1]} : vector<16x384xf32> to vector<16x128xf32>
    %19 = arith.truncf %18 : vector<16x128xf32> to vector<16x128xbf16>
    %c0_9 = arith.constant 0 : index
    %c0_10 = arith.constant 0 : index
    %20 = vector.load %arg2[%c0_9, %c0_10] : memref<16x16xf32, #tpu.memory_space<vmem>>, vector<16x16xf32>
    %c0_11 = arith.constant 0 : index
    %c0_12 = arith.constant 0 : index
    %c384 = arith.constant 384 : index
    %21 = vector.load %arg5[%c0_11, %c0_12, %c384] : memref<1x128x768xbf16, #tpu.memory_space<vmem>>, vector<1x128x128xbf16>
    %22 = vector.shape_cast %21 : vector<1x128x128xbf16> to vector<128x128xbf16>
    %c0_13 = arith.constant 0 : index
    %c0_14 = arith.constant 0 : index
    %c384_15 = arith.constant 384 : index
    %23 = vector.load %arg7[%c0_13, %c0_14, %c384_15] : memref<1x1x1408xf32, #tpu.memory_space<vmem>>, vector<1x1x128xf32>
    %24 = vector.shape_cast %23 : vector<1x1x128xf32> to vector<1x128xf32>
    %25 = vector.extract_strided_slice %15 {offsets = [0, 0], sizes = [16, 64], strides = [1, 1]} : vector<16x128xbf16> to vector<16x64xbf16>
    %26 = vector.extract_strided_slice %17 {offsets = [0, 0], sizes = [16, 64], strides = [1, 1]} : vector<16x128xbf16> to vector<16x64xbf16>
    %cst_16 = arith.constant dense<0.000000e+00> : vector<16x16xf32>
    %27 = tpu.matmul %25, %26, %cst_16 {dimension_numbers = #tpu.dot_dimension_numbers<[1], [1], [0], [0], [0, 0, 1, 0], [], []>} : vector<16x64xbf16>, vector<16x64xbf16>, vector<16x16xf32> -> vector<16x16xf32>
    %28 = arith.addf %27, %20 : vector<16x16xf32>
    %cst_17 = arith.constant dense<0xFF800000> : vector<16xf32>
    %29 = vector.multi_reduction <maximumf>, %28, %cst_17 [1] : vector<16x16xf32> to vector<16xf32>
    %30 = vector.shape_cast %29 : vector<16xf32> to vector<16x1xf32>
    %31 = vector.broadcast %30 : vector<16x1xf32> to vector<16x16xf32>
    %32 = arith.subf %28, %31 : vector<16x16xf32>
    %33 = math.exp %32 : vector<16x16xf32>
    %cst_18 = arith.constant dense<0.000000e+00> : vector<16xf32>
    %34 = vector.multi_reduction <add>, %33, %cst_18 [1] : vector<16x16xf32> to vector<16xf32>
    %35 = vector.shape_cast %34 : vector<16xf32> to vector<16x1xf32>
    %36 = tpu.reciprocal %35 {approx = true} : vector<16x1xf32> -> vector<16x1xf32>
    %37 = vector.broadcast %36 : vector<16x1xf32> to vector<16x16xf32>
    %38 = arith.mulf %33, %37 : vector<16x16xf32>
    %39 = arith.truncf %38 : vector<16x16xf32> to vector<16x16xbf16>
    %40 = vector.extract_strided_slice %19 {offsets = [0, 0], sizes = [16, 64], strides = [1, 1]} : vector<16x128xbf16> to vector<16x64xbf16>
    %cst_19 = arith.constant dense<0.000000e+00> : vector<16x64xf32>
    %41 = tpu.matmul %39, %40, %cst_19 {dimension_numbers = #tpu.dot_dimension_numbers<[1], [0], [0], [1], [0, 0, 1, 1], [], []>} : vector<16x16xbf16>, vector<16x64xbf16>, vector<16x64xf32> -> vector<16x64xf32>
    %42 = arith.truncf %41 : vector<16x64xf32> to vector<16x64xbf16>
    %43 = vector.extract_strided_slice %22 {offsets = [0, 0], sizes = [64, 128], strides = [1, 1]} : vector<128x128xbf16> to vector<64x128xbf16>
    %cst_20 = arith.constant dense<0.000000e+00> : vector<16x128xf32>
    %44 = tpu.matmul %42, %43, %cst_20 {dimension_numbers = #tpu.dot_dimension_numbers<[1], [0], [0], [1], [0, 0, 1, 1], [], []>} : vector<16x64xbf16>, vector<64x128xbf16>, vector<16x128xf32> -> vector<16x128xf32>
    %45 = vector.broadcast %24 : vector<1x128xf32> to vector<16x128xf32>
    %46 = arith.addf %45, %44 : vector<16x128xf32>
    %47 = vector.extract_strided_slice %15 {offsets = [0, 64], sizes = [16, 64], strides = [1, 1]} : vector<16x128xbf16> to vector<16x64xbf16>
    %48 = vector.extract_strided_slice %17 {offsets = [0, 64], sizes = [16, 64], strides = [1, 1]} : vector<16x128xbf16> to vector<16x64xbf16>
    %cst_21 = arith.constant dense<0.000000e+00> : vector<16x16xf32>
    %49 = tpu.matmul %47, %48, %cst_21 {dimension_numbers = #tpu.dot_dimension_numbers<[1], [1], [0], [0], [0, 0, 1, 0], [], []>} : vector<16x64xbf16>, vector<16x64xbf16>, vector<16x16xf32> -> vector<16x16xf32>
    %50 = arith.addf %49, %20 : vector<16x16xf32>
    %cst_22 = arith.constant dense<0xFF800000> : vector<16xf32>
    %51 = vector.multi_reduction <maximumf>, %50, %cst_22 [1] : vector<16x16xf32> to vector<16xf32>
    %52 = vector.shape_cast %51 : vector<16xf32> to vector<16x1xf32>
    %53 = vector.broadcast %52 : vector<16x1xf32> to vector<16x16xf32>
    %54 = arith.subf %50, %53 : vector<16x16xf32>
    %55 = math.exp %54 : vector<16x16xf32>
    %cst_23 = arith.constant dense<0.000000e+00> : vector<16xf32>
    %56 = vector.multi_reduction <add>, %55, %cst_23 [1] : vector<16x16xf32> to vector<16xf32>
    %57 = vector.shape_cast %56 : vector<16xf32> to vector<16x1xf32>
    %58 = tpu.reciprocal %57 {approx = true} : vector<16x1xf32> -> vector<16x1xf32>
    %59 = vector.broadcast %58 : vector<16x1xf32> to vector<16x16xf32>
    %60 = arith.mulf %55, %59 : vector<16x16xf32>
    %61 = arith.truncf %60 : vector<16x16xf32> to vector<16x16xbf16>
    %62 = vector.extract_strided_slice %19 {offsets = [0, 64], sizes = [16, 64], strides = [1, 1]} : vector<16x128xbf16> to vector<16x64xbf16>
    %cst_24 = arith.constant dense<0.000000e+00> : vector<16x64xf32>
    %63 = tpu.matmul %61, %62, %cst_24 {dimension_numbers = #tpu.dot_dimension_numbers<[1], [0], [0], [1], [0, 0, 1, 1], [], []>} : vector<16x16xbf16>, vector<16x64xbf16>, vector<16x64xf32> -> vector<16x64xf32>
    %64 = arith.truncf %63 : vector<16x64xf32> to vector<16x64xbf16>
    %65 = vector.extract_strided_slice %22 {offsets = [64, 0], sizes = [64, 128], strides = [1, 1]} : vector<128x128xbf16> to vector<64x128xbf16>
    %cst_25 = arith.constant dense<0.000000e+00> : vector<16x128xf32>
    %66 = tpu.matmul %64, %65, %cst_25 {dimension_numbers = #tpu.dot_dimension_numbers<[1], [0], [0], [1], [0, 0, 1, 1], [], []>} : vector<16x64xbf16>, vector<64x128xbf16>, vector<16x128xf32> -> vector<16x128xf32>
    %67 = arith.addf %46, %66 : vector<16x128xf32>
    %68 = arith.addf %3, %67 : vector<16x128xf32>
    %c0_26 = arith.constant 0 : index
    %c0_27 = arith.constant 0 : index
    %c512 = arith.constant 512 : index
    %69 = vector.load %arg7[%c0_26, %c0_27, %c512] : memref<1x1x1408xf32, #tpu.memory_space<vmem>>, vector<1x1x128xf32>
    %70 = vector.shape_cast %69 : vector<1x1x128xf32> to vector<1x128xf32>
    %c0_28 = arith.constant 0 : index
    %c0_29 = arith.constant 0 : index
    %c640 = arith.constant 640 : index
    %71 = vector.load %arg7[%c0_28, %c0_29, %c640] : memref<1x1x1408xf32, #tpu.memory_space<vmem>>, vector<1x1x128xf32>
    %72 = vector.shape_cast %71 : vector<1x1x128xf32> to vector<1x128xf32>
    %cst_30 = arith.constant dense<0.000000e+00> : vector<16xf32>
    %73 = vector.multi_reduction <add>, %68, %cst_30 [1] : vector<16x128xf32> to vector<16xf32>
    %74 = vector.shape_cast %73 : vector<16xf32> to vector<16x1xf32>
    %cst_31 = arith.constant 1.280000e+02 : f32
    %75 = vector.broadcast %cst_31 : f32 to vector<16x1xf32>
    %76 = arith.divf %74, %75 : vector<16x1xf32>
    %77 = vector.broadcast %76 : vector<16x1xf32> to vector<16x128xf32>
    %78 = arith.subf %68, %77 : vector<16x128xf32>
    %79 = arith.mulf %78, %78 : vector<16x128xf32>
    %cst_32 = arith.constant dense<0.000000e+00> : vector<16xf32>
    %80 = vector.multi_reduction <add>, %79, %cst_32 [1] : vector<16x128xf32> to vector<16xf32>
    %81 = vector.shape_cast %80 : vector<16xf32> to vector<16x1xf32>
    %cst_33 = arith.constant 1.280000e+02 : f32
    %82 = vector.broadcast %cst_33 : f32 to vector<16x1xf32>
    %83 = arith.divf %81, %82 : vector<16x1xf32>
    %84 = vector.broadcast %76 : vector<16x1xf32> to vector<16x128xf32>
    %85 = arith.subf %68, %84 : vector<16x128xf32>
    %cst_34 = arith.constant 9.99999996E-13 : f32
    %86 = vector.broadcast %cst_34 : f32 to vector<16x1xf32>
    %87 = arith.addf %83, %86 : vector<16x1xf32>
    %88 = math.rsqrt %87 : vector<16x1xf32>
    %89 = vector.broadcast %88 : vector<16x1xf32> to vector<16x128xf32>
    %90 = arith.mulf %85, %89 : vector<16x128xf32>
    %91 = vector.broadcast %70 : vector<1x128xf32> to vector<16x128xf32>
    %92 = arith.mulf %90, %91 : vector<16x128xf32>
    %93 = vector.broadcast %72 : vector<1x128xf32> to vector<16x128xf32>
    %94 = arith.addf %92, %93 : vector<16x128xf32>
    %95 = arith.truncf %94 : vector<16x128xf32> to vector<16x128xbf16>
    %c0_35 = arith.constant 0 : index
    %c0_36 = arith.constant 0 : index
    %c512_37 = arith.constant 512 : index
    %96 = vector.load %arg5[%c0_35, %c0_36, %c512_37] : memref<1x128x768xbf16, #tpu.memory_space<vmem>>, vector<1x128x256xbf16>
    %97 = vector.shape_cast %96 : vector<1x128x256xbf16> to vector<128x256xbf16>
    %cst_38 = arith.constant dense<0.000000e+00> : vector<16x256xf32>
    %98 = tpu.matmul %95, %97, %cst_38 {dimension_numbers = #tpu.dot_dimension_numbers<[1], [0], [0], [1], [0, 0, 1, 1], [], []>} : vector<16x128xbf16>, vector<128x256xbf16>, vector<16x256xf32> -> vector<16x256xf32>
    %c0_39 = arith.constant 0 : index
    %c0_40 = arith.constant 0 : index
    %c768 = arith.constant 768 : index
    %99 = vector.load %arg7[%c0_39, %c0_40, %c768] : memref<1x1x1408xf32, #tpu.memory_space<vmem>>, vector<1x1x256xf32>
    %100 = vector.shape_cast %99 : vector<1x1x256xf32> to vector<1x256xf32>
    %101 = vector.broadcast %100 : vector<1x256xf32> to vector<16x256xf32>
    %102 = arith.addf %98, %101 : vector<16x256xf32>
    %103 = arith.mulf %102, %102 : vector<16x256xf32>
    %104 = arith.mulf %102, %103 : vector<16x256xf32>
    %cst_41 = arith.constant 4.471500e-02 : f32
    %105 = vector.broadcast %cst_41 : f32 to vector<16x256xf32>
    %106 = arith.mulf %105, %104 : vector<16x256xf32>
    %107 = arith.addf %102, %106 : vector<16x256xf32>
    %cst_42 = arith.constant 0.797884583 : f32
    %108 = vector.broadcast %cst_42 : f32 to vector<16x256xf32>
    %109 = arith.mulf %108, %107 : vector<16x256xf32>
    %110 = math.tanh %109 : vector<16x256xf32>
    %cst_43 = arith.constant 1.000000e+00 : f32
    %111 = vector.broadcast %cst_43 : f32 to vector<16x256xf32>
    %112 = arith.addf %111, %110 : vector<16x256xf32>
    %cst_44 = arith.constant 5.000000e-01 : f32
    %113 = vector.broadcast %cst_44 : f32 to vector<16x256xf32>
    %114 = arith.mulf %113, %112 : vector<16x256xf32>
    %115 = arith.mulf %102, %114 : vector<16x256xf32>
    %116 = arith.truncf %115 : vector<16x256xf32> to vector<16x256xbf16>
    %c0_45 = arith.constant 0 : index
    %c0_46 = arith.constant 0 : index
    %c0_47 = arith.constant 0 : index
    %117 = vector.load %arg6[%c0_45, %c0_46, %c0_47] : memref<1x256x128xbf16, #tpu.memory_space<vmem>>, vector<1x256x128xbf16>
    %118 = vector.shape_cast %117 : vector<1x256x128xbf16> to vector<256x128xbf16>
    %cst_48 = arith.constant dense<0.000000e+00> : vector<16x128xf32>
    %119 = tpu.matmul %116, %118, %cst_48 {dimension_numbers = #tpu.dot_dimension_numbers<[1], [0], [0], [1], [0, 0, 1, 1], [], []>} : vector<16x256xbf16>, vector<256x128xbf16>, vector<16x128xf32> -> vector<16x128xf32>
    %c0_49 = arith.constant 0 : index
    %c0_50 = arith.constant 0 : index
    %c1024 = arith.constant 1024 : index
    %120 = vector.load %arg7[%c0_49, %c0_50, %c1024] : memref<1x1x1408xf32, #tpu.memory_space<vmem>>, vector<1x1x128xf32>
    %121 = vector.shape_cast %120 : vector<1x1x128xf32> to vector<1x128xf32>
    %122 = vector.broadcast %121 : vector<1x128xf32> to vector<16x128xf32>
    %123 = arith.addf %119, %122 : vector<16x128xf32>
    %124 = arith.addf %94, %123 : vector<16x128xf32>
    %c0_51 = arith.constant 0 : index
    %c0_52 = arith.constant 0 : index
    %c1152 = arith.constant 1152 : index
    %125 = vector.load %arg7[%c0_51, %c0_52, %c1152] : memref<1x1x1408xf32, #tpu.memory_space<vmem>>, vector<1x1x128xf32>
    %126 = vector.shape_cast %125 : vector<1x1x128xf32> to vector<1x128xf32>
    %c0_53 = arith.constant 0 : index
    %c0_54 = arith.constant 0 : index
    %c1280 = arith.constant 1280 : index
    %127 = vector.load %arg7[%c0_53, %c0_54, %c1280] : memref<1x1x1408xf32, #tpu.memory_space<vmem>>, vector<1x1x128xf32>
    %128 = vector.shape_cast %127 : vector<1x1x128xf32> to vector<1x128xf32>
    %cst_55 = arith.constant dense<0.000000e+00> : vector<16xf32>
    %129 = vector.multi_reduction <add>, %124, %cst_55 [1] : vector<16x128xf32> to vector<16xf32>
    %130 = vector.shape_cast %129 : vector<16xf32> to vector<16x1xf32>
    %cst_56 = arith.constant 1.280000e+02 : f32
    %131 = vector.broadcast %cst_56 : f32 to vector<16x1xf32>
    %132 = arith.divf %130, %131 : vector<16x1xf32>
    %133 = vector.broadcast %132 : vector<16x1xf32> to vector<16x128xf32>
    %134 = arith.subf %124, %133 : vector<16x128xf32>
    %135 = arith.mulf %134, %134 : vector<16x128xf32>
    %cst_57 = arith.constant dense<0.000000e+00> : vector<16xf32>
    %136 = vector.multi_reduction <add>, %135, %cst_57 [1] : vector<16x128xf32> to vector<16xf32>
    %137 = vector.shape_cast %136 : vector<16xf32> to vector<16x1xf32>
    %cst_58 = arith.constant 1.280000e+02 : f32
    %138 = vector.broadcast %cst_58 : f32 to vector<16x1xf32>
    %139 = arith.divf %137, %138 : vector<16x1xf32>
    %140 = vector.broadcast %132 : vector<16x1xf32> to vector<16x128xf32>
    %141 = arith.subf %124, %140 : vector<16x128xf32>
    %cst_59 = arith.constant 9.99999996E-13 : f32
    %142 = vector.broadcast %cst_59 : f32 to vector<16x1xf32>
    %143 = arith.addf %139, %142 : vector<16x1xf32>
    %144 = math.rsqrt %143 : vector<16x1xf32>
    %145 = vector.broadcast %144 : vector<16x1xf32> to vector<16x128xf32>
    %146 = arith.mulf %141, %145 : vector<16x128xf32>
    %147 = vector.broadcast %126 : vector<1x128xf32> to vector<16x128xf32>
    %148 = arith.mulf %146, %147 : vector<16x128xf32>
    %149 = vector.broadcast %128 : vector<1x128xf32> to vector<16x128xf32>
    %150 = arith.addf %148, %149 : vector<16x128xf32>
    %c0_60 = arith.constant 0 : index
    %c0_61 = arith.constant 0 : index
    %151 = vector.load %arg13[%c0_60, %c0_61] : memref<16x128xf32, #tpu.memory_space<vmem>>, vector<16x128xf32>
    tpu.vector_store %arg13[%c0_60, %c0_61], %150 {strides = array<i32>} : memref<16x128xf32, #tpu.memory_space<vmem>>, vector<16x128xf32>,
    %c1_i32 = arith.constant 1 : i32
    %152 = arith.cmpi eq, %arg0, %c1_i32 : i32
    %153 = arith.extui %152 : i1 to i32
    %c0_i32_62 = arith.constant 0 : i32
    %154 = arith.cmpi ne, %153, %c0_i32_62 : i32
    scf.if %154 {
      %155 = vector.extract_strided_slice %150 {offsets = [0, 0], sizes = [1, 128], strides = [1, 1]} : vector<16x128xf32> to vector<1x128xf32>
      %156 = vector.extract_strided_slice %150 {offsets = [8, 0], sizes = [1, 128], strides = [1, 1]} : vector<16x128xf32> to vector<1x128xf32>
      %157 = tpu.concatenate %155, %156 in 0 : vector<1x128xf32>, vector<1x128xf32> -> vector<2x128xf32>
      %158 = arith.truncf %157 : vector<2x128xf32> to vector<2x128xbf16>
      %c0_63 = arith.constant 0 : index
      %c0_64 = arith.constant 0 : index
      %159 = vector.load %arg8[%c0_63, %c0_64] : memref<128x128xbf16, #tpu.memory_space<vmem>>, vector<128x128xbf16>
      %cst_65 = arith.constant dense<0.000000e+00> : vector<2x128xf32>
      %160 = tpu.matmul %158, %159, %cst_65 {dimension_numbers = #tpu.dot_dimension_numbers<[1], [0], [0], [1], [0, 0, 1, 1], [], []>} : vector<2x128xbf16>, vector<128x128xbf16>, vector<2x128xf32> -> vector<2x128xf32>
      %c0_66 = arith.constant 0 : index
      %c0_67 = arith.constant 0 : index
      %161 = vector.load %arg9[%c0_66, %c0_67] : memref<1x128xf32, #tpu.memory_space<vmem>>, vector<1x128xf32>
      %162 = vector.broadcast %161 : vector<1x128xf32> to vector<2x128xf32>
      %163 = arith.addf %160, %162 : vector<2x128xf32>
      %164 = math.tanh %163 : vector<2x128xf32>
      %165 = arith.truncf %164 : vector<2x128xf32> to vector<2x128xbf16>
      %c0_68 = arith.constant 0 : index
      %c0_69 = arith.constant 0 : index
      %166 = vector.load %arg10[%c0_68, %c0_69] : memref<128x128xbf16, #tpu.memory_space<vmem>>, vector<128x128xbf16>
      %cst_70 = arith.constant dense<0.000000e+00> : vector<2x128xf32>
      %167 = tpu.matmul %165, %166, %cst_70 {dimension_numbers = #tpu.dot_dimension_numbers<[1], [0], [0], [1], [0, 0, 1, 1], [], []>} : vector<2x128xbf16>, vector<128x128xbf16>, vector<2x128xf32> -> vector<2x128xf32>
      %c0_71 = arith.constant 0 : index
      %c0_72 = arith.constant 0 : index
      %168 = vector.load %arg11[%c0_71, %c0_72] : memref<1x128xf32, #tpu.memory_space<vmem>>, vector<1x128xf32>
      %169 = vector.broadcast %168 : vector<1x128xf32> to vector<2x128xf32>
      %170 = arith.addf %167, %169 : vector<2x128xf32>
      %c0_73 = arith.constant 0 : index
      %c0_74 = arith.constant 0 : index
      %171 = vector.load %arg12[%c0_73, %c0_74] : memref<2x128xf32, #tpu.memory_space<vmem>>, vector<2x128xf32>
      tpu.vector_store %arg12[%c0_73, %c0_74], %170 {strides = array<i32>} : memref<2x128xf32, #tpu.memory_space<vmem>>, vector<2x128xf32>,
    } else {
    }
    return
  }
  func.func @transform_0(%arg0: i32) -> (i32, i32) {
    %c0_i32 = arith.constant 0 : i32
    %c0_i32_0 = arith.constant 0 : i32
    %c0_i32_1 = arith.constant 0 : i32
    return %c0_i32, %c0_i32_0 : i32, i32
  }
  func.func @transform_1(%arg0: i32) -> (i32, i32) {
    %c0_i32 = arith.constant 0 : i32
    %c0_i32_0 = arith.constant 0 : i32
    %c0_i32_1 = arith.constant 0 : i32
    return %c0_i32, %c0_i32_0 : i32, i32
  }
  func.func @transform_2(%arg0: i32) -> (i32, i32) {
    %c0_i32 = arith.constant 0 : i32
    %c0_i32_0 = arith.constant 0 : i32
    %c0_i32_1 = arith.constant 0 : i32
    return %c0_i32, %c0_i32_0 : i32, i32
  }
  func.func @transform_3(%arg0: i32) -> (i32, i32) {
    %c0_i32 = arith.constant 0 : i32
    %c0_i32_0 = arith.constant 0 : i32
    %c0_i32_1 = arith.constant 0 : i32
    return %c0_i32, %c0_i32_0 : i32, i32
  }
  func.func @transform_4(%arg0: i32) -> (i32, i32, i32) {
    %c0_i32 = arith.constant 0 : i32
    %c0_i32_0 = arith.constant 0 : i32
    %c0_i32_1 = arith.constant 0 : i32
    return %arg0, %c0_i32, %c0_i32_0 : i32, i32, i32
  }
  func.func @transform_5(%arg0: i32) -> (i32, i32, i32) {
    %c0_i32 = arith.constant 0 : i32
    %c0_i32_0 = arith.constant 0 : i32
    %c0_i32_1 = arith.constant 0 : i32
    return %arg0, %c0_i32, %c0_i32_0 : i32, i32, i32
  }
  func.func @transform_6(%arg0: i32) -> (i32, i32, i32) {
    %c0_i32 = arith.constant 0 : i32
    %c0_i32_0 = arith.constant 0 : i32
    %c0_i32_1 = arith.constant 0 : i32
    return %arg0, %c0_i32, %c0_i32_0 : i32, i32, i32
  }
  func.func @transform_7(%arg0: i32) -> (i32, i32) {
    %c0_i32 = arith.constant 0 : i32
    %c0_i32_0 = arith.constant 0 : i32
    %c0_i32_1 = arith.constant 0 : i32
    return %c0_i32, %c0_i32_0 : i32, i32
  }
  func.func @transform_8(%arg0: i32) -> (i32, i32) {
    %c0_i32 = arith.constant 0 : i32
    %c0_i32_0 = arith.constant 0 : i32
    %c0_i32_1 = arith.constant 0 : i32
    return %c0_i32, %c0_i32_0 : i32, i32
  }
  func.func @transform_9(%arg0: i32) -> (i32, i32) {
    %c0_i32 = arith.constant 0 : i32
    %c0_i32_0 = arith.constant 0 : i32
    %c0_i32_1 = arith.constant 0 : i32
    return %c0_i32, %c0_i32_0 : i32, i32
  }
  func.func @transform_10(%arg0: i32) -> (i32, i32) {
    %c0_i32 = arith.constant 0 : i32
    %c0_i32_0 = arith.constant 0 : i32
    %c0_i32_1 = arith.constant 0 : i32
    return %c0_i32, %c0_i32_0 : i32, i32
  }
  func.func @transform_11(%arg0: i32) -> (i32, i32) {
    %c0_i32 = arith.constant 0 : i32
    %c0_i32_0 = arith.constant 0 : i32
    %c0_i32_1 = arith.constant 0 : i32
    return %c0_i32, %c0_i32_0 : i32, i32
  }
}

</mosaic_0001>

<bundles_post_ra>
// kernel: bert_classifier_forward.1
= control target key start
LH: loop header
LB: loop body
LE: loop exit
PB: predicated region body
PF: predicated region fallthrough
CT: control target
= control target key end

     0   :  { %s3053_s0 = inlined_call_operand.vmem [shape: f32[16,128], index: 0, kind: input, shape index: {}]   ;;  %s3054_s1 = inlined_call_operand.vmem [shape: f32[16,16], index: 1, kind: input, shape index: {}]   ;;  %s3055_s2 = inlined_call_operand.vmem [shape: f32[1,128], index: 2, kind: input, shape index: {}]   ;;  %s3056_s3 = inlined_call_operand.vmem [shape: f32[1,128], index: 3, kind: input, shape index: {}]   ;;  %s3057_s4 = inlined_call_operand.hbm [shape: bf16[2,128,768], index: 4, kind: input, shape index: {}]   ;;  %s3058_s5 = inlined_call_operand.hbm [shape: bf16[2,256,128], index: 5, kind: input, shape index: {}]   ;;  %s3059_s6 = inlined_call_operand.vmem [shape: f32[2,1,1408], index: 6, kind: input, shape index: {}]   ;;  %s3060_s7 = inlined_call_operand.vmem [shape: bf16[128,128], index: 7, kind: input, shape index: {}]   ;;  %s3061_s8 = inlined_call_operand.vmem [shape: f32[1,128], index: 8, kind: input, shape index: {}]   ;;  %s3062_s9 = inlined_call_operand.vmem [shape: bf16[128,128], index: 9, kind: input, shape index: {}]   ;;  %s3063_s10 = inlined_call_operand.vmem [shape: f32[1,128], index: 10, kind: input, shape index: {}]   ;;  %s3064_s11 = inlined_call_operand.hbm [shape: f32[2,128], index: 11, kind: output, shape index: {}]  }
   0x1   :  { %3067 = sst [smem:[#allocation14_spill]] %s3057_s4 }
   0x2   :  { %16 = vsyncpa [#allocation4], 0 }
   0x3   :  { %18 = vsyncpa [#allocation4 + $0x1], 0 }
   0x4   :  { %19 = vsyncpa [#allocation7], 0 }
   0x5   :  { %21 = vsyncpa [#allocation7 + $0x1], 0 }
   0x6   :  { %22 = vsyncpa [#allocation5], 0  ;;  %s2639_s17 = smov 0   ;;  %s2641_s18 = smov 0  }
   0x7   :  { %s2643_s19 = smov 0   ;;  %s2645_s20 = smov 0  }
   0x8 LB: > { %3068 = sst [smem:[#allocation12_spill]] %s2560_s19  ;;  %s2658_s21 = sadd.s32 4294967295, %s2564_s20   ;;  %s2564_s20 = sphi %s2645_s20, %s3080_s20   ;;  %s2560_s19 = sphi %s2643_s19, %s3077_s19   ;;  %s2556_s18 = sphi %s2641_s18, %s3079_s18   ;;  %s2552_s17 = sphi %s2639_s17, %s3078_s17  }
   0x9   : > { %s2661_s22 = sadd.s32 1, %s2564_s20   ;;  %s119_s24 = sadd.s32 1, %s2560_s19 }
   0xa   : > { %s116_s23 = ssub.s32 %s2564_s20, %s2661_s22  ;;  %p126_p1 = scmp.ne.s32.totalorder %s2560_s19, %s2556_s18 }
   0xb   : > { %p117_p0 = scmp.eq.s32.totalorder %s116_s23, 0  ;;  %p127_p2 = scmp.eq.s32.totalorder %s2564_s20, 0 }
   0xc   : > { %p132_p3 = scmp.ne.s32.totalorder %s2556_s18, %s2552_s17  ;;  %p133_p5 = scmp.eq.s32.totalorder %s2658_s21, 0 }
   0xd   : > { %s2671_s25 = scalar_select %p117_p0, %s2560_s19, %s119_s24  }
   0xe   : > { %p128_p4 = por %p127_p2, %p126_p1  ;;  %p2262_p6 = scmp.lt.s32.totalorder %s2564_s20, 2 }
   0xf   : > { %3069 = sst [smem:[#allocation13_spill]] %s2671_s25  ;;  %p2675_p7 = por %p133_p5, %p132_p3 }
  0x10   : > { %s2680_s27 = sand.u32 1, %s2560_s19   ;;  %s2244_s29 = smul.u32 6144, %s2564_s20 }
  0x11   : > { %s3070_s26 = scalar_select %p2675_p7, 1, 0 }
  0x12   : > { %s2243_s28 = smul.u32 384, %s2680_s27  ;;  %p2684_p8 = pnand %p2262_p6, %p128_p4 }
  0x13   : > { %s3072_s4 = sld [smem:[#allocation14_spill]]  ;;  %s338_s17 = scalar_lea.sflag [#allocation4], %s2680_s27 }
  0x14   : > { %s341_s15 = scalar_lea.vmem [#allocation3], %s2243_s28  ;;  %p2444_p11 = pneg %p2684_p8 }
  0x15   : > { %s348_s16 = sshll.u32 %s341_s15, 4  ;;  %s2693_s16 = int_to_ptr.vmem [resolvable:$true] %s348_s16 }
  0x19   : > { %s2691_s14 = scalar_lea.hbm %s3072_s4, %s2244_s29  ;;  %s2447_s12 = scalar_lea.hbm %s3072_s4, 12288 }
  0x1a   : > { %s2442_s23 = scalar_lea.hbm %s2691_s14, 6144  ;;  %p2448_p0 = scmp.lt.s32.totalorder %s2691_s14, %s3072_s4 }
  0x1b   : > { %p2443_p10 = scmp.ne.s32.totalorder %s2691_s14, %s2442_s23  ;;  %p2449_p1 = scmp.lt.s32.totalorder %s2447_s12, %s2442_s23 }
  0x1d   : > { %p2445_p12 = pnand %p2444_p11, %p2443_p10  ;;  %p2450_p2 = por %p2449_p1, %p2448_p0 }
  0x1f   : > { %p2446_p13 = pneg %p2445_p12 }
  0x21   : > { %p2451_p3 = pnand %p2450_p2, %p2446_p13 }
  0x23   : > { %2454 = shalt.err (!%p2451_p3)
}
  0x24   : > { %s2455_s28 = scalar_lea.vmem %s2693_s16, 6144  ;;  %s2566_s15 = smov [#allocation3]  }
  0x25   : > { %p2456_p4 = scmp.ne.s32.totalorder %s2693_s16, %s2455_s28  ;;  %s2460_s24 = sshll.u32 %s2566_s15, 4  ;;  %s2461_s24 = int_to_ptr.vmem [resolvable:$false] %s2460_s24 }
  0x26   : > { %s2462_s29 = scalar_lea.vmem %s2461_s24, 12288  ;;  %p2463_p10 = scmp.lt.s32.totalorder %s2693_s16, %s2461_s24 }
  0x27   : > { %p2458_p5 = pnand %p2456_p4, %p2444_p11  ;;  %p2464_p12 = scmp.lt.s32.totalorder %s2462_s29, %s2455_s28 }
  0x29   : > { %p2459_p6 = pneg %p2458_p5  ;;  %p2465_p9 = por %p2464_p12, %p2463_p10 }
  0x2b   : > { %p2466_p0 = pnand %p2465_p9, %p2459_p6 }
  0x2d   : > { %2469 = shalt.err (!%p2466_p0)
}
  0x2e   : > { %s2567_s25 = smov 384   ;;  %s2568_s23 = smov 24  }
  0x2f   : > { %2258 = dma.hbm_to_vmem [thread:$0]  (!%p2684_p8), %s2691_s14, 6144, %s2693_s16, %s338_s17, %s2567_s25, %s2567_s25, %s2568_s23  }
  0x30   : > { %p384_p13 = scmp.lt.s32.totalorder %s2564_s20, 3  ;;  %s1960_s12 = sshll.u32 %s2680_s27, 7 }
  0x31   : > { %s2067_s13 = sshll.u32 %s2564_s20, 11  ;;  %p3073_p9 = scmp.ge.s32.totalorder %s2564_s20, 1 }
  0x32   : > { %s2735_s29 = scalar_lea.hbm %s3058_s5, %s2067_s13  ;;  %s362_s4 = scalar_lea.vmem [#allocation6], %s1960_s12 }
  0x33   : > { %p2728_p1 = pnand %p3073_p9, %p384_p13  ;;  %s369_s19 = sshll.u32 %s362_s4, 4  ;;  %s2737_s19 = int_to_ptr.vmem [resolvable:$true] %s369_s19 }
  0x34   : > { %s359_s14 = scalar_lea.sflag [#allocation7], %s2680_s27  ;;  %s2470_s16 = scalar_lea.hbm %s2735_s29, 2048 }
  0x35   : > { %p2471_p2 = scmp.ne.s32.totalorder %s2735_s29, %s2470_s16  ;;  %s2475_s25 = scalar_lea.hbm %s3058_s5, 4096 }
  0x36   : > { %p2476_p5 = scmp.lt.s32.totalorder %s2735_s29, %s3058_s5  ;;  %p2477_p6 = scmp.lt.s32.totalorder %s2475_s25, %s2470_s16 }
  0x37   : > { %p2473_p3 = pnand %p2471_p2, %p2444_p11 }
  0x38   : > { %p2478_p10 = por %p2477_p6, %p2476_p5 }
  0x39   : > { %p2474_p4 = pneg %p2473_p3 }
  0x3b   : > { %p2479_p12 = pnand %p2478_p10, %p2474_p4 }
  0x3d   : > { %2482 = shalt.err (!%p2479_p12)
}
  0x3e   : > { %s2483_s4 = scalar_lea.vmem %s2737_s19, 2048  ;;  %s2569_s12 = smov [#allocation6]  }
  0x3f   : > { %p2484_p0 = scmp.ne.s32.totalorder %s2737_s19, %s2483_s4  ;;  %s2488_s15 = sshll.u32 %s2569_s12, 4  ;;  %s2489_s15 = int_to_ptr.vmem [resolvable:$false] %s2488_s15 }
  0x40   : > { %s2490_s24 = scalar_lea.vmem %s2489_s15, 4096  ;;  %p2491_p2 = scmp.lt.s32.totalorder %s2737_s19, %s2489_s15 }
  0x41   : > { %p2486_p13 = pnand %p2484_p0, %p2444_p11  ;;  %p2492_p3 = scmp.lt.s32.totalorder %s2490_s24, %s2483_s4 }
  0x43   : > { %p2487_p9 = pneg %p2486_p13  ;;  %p2493_p7 = por %p2492_p3, %p2491_p2 }
  0x45   : > { %p2494_p5 = pnand %p2493_p7, %p2487_p9 }
  0x47   : > { %2497 = shalt.err (!%p2494_p5)
}
  0x48   : > { %s2570_s16 = smov 64   ;;  %s2571_s20 = smov 4  }
  0x49   : > { %2261 = dma.hbm_to_vmem [thread:$0]  (!%p2684_p8), %s2735_s29, 2048, %s2737_s19, %s359_s14, %s2570_s16, %s2570_s16, %s2571_s20  }
  0x4a   : > { %388 = sbr.rel (%p2728_p1) target bundleno = 3594 (0xe0a), region = 64  ;;  %s390_s17 = sand.u32 (!%p2728_p1), 1, %s2556_s18  }
  0x4b   : > { %s2245_s25 = smul.u32 (!%p2728_p1), 384, %s390_s17  ;;  %s391_s23 = scalar_lea.sflag (!%p2728_p1), [#allocation4], %s390_s17 }
  0x4c   : > { %p3075_p7 = scmp.ne.s32.totalorder (!%p2728_p1), %s3070_s26, 0 }
  0x4d   : > { %s2767_s13 = scalar_lea.vmem (!%p2728_p1), [#allocation3], %s2245_s25 }
  0x4f   : > { %2539 = dma.done.wait (%p3075_p7), %s391_s23, 6144  }
  0x50   : > { %2541 = vsyncadd (%p3075_p7), %s391_s23, 4294961152  ;;  %s1964_s4 = sshll.u32 %s390_s17, 7  ;;  %s400_s30 = scalar_lea.sflag [#allocation7], %s390_s17 }
  0x51   : > { %s2773_s27 = scalar_lea.vmem [#allocation6], %s1964_s4 }
  0x52   : > { %2543 = dma.done.wait (%p3075_p7), %s400_s30, 2048  }
  0x53   : > { %2545 = vsyncadd (%p3075_p7), %s400_s30, 4294965248  ;;  %p446_p8 = scmp.lt.s32.totalorder %s2658_s21, 1  ;;  %p1965_p11 = scmp.ne.s32.totalorder %s2658_s21, 0 }
  0x55   : > { %s447_s19 = scalar_select %p446_p8, %s2658_s21, 1 }
  0x56   : > { %454 = sbr.rel (%p1965_p11) target bundleno = 403 (0x193), region = 76 }
  0x57   : > { %s2246_s28 = smul.u32 11, %s447_s19 }
  0x59   : > { %s2784_s12 = scalar_lea.vmem %s3059_s6, %s2246_s28 }
  0x5b   : > { %v455_v0 = vld [vmem:[%s3053_s0] sm:$0xff]  ;;  %v456_v1 = vld [vmem:[%s3053_s0 + $0x8] sm:$0xff] }
  0x5c   : > { %459 = vadd.xlane.f32.xlu0 %v455_v0  ;;  %v1966_v17 = vld [vmem:[%s3055_s2] ss:$0 sm:$0xff] }
  0x5d   : > { %v1967_v19 = vld [vmem:[%s3056_s3] ss:$0 sm:$0xff] }
  0x60   : > { %461 = vadd.xlane.f32.xlu0 %v456_v1 }
  0xe5   : > { %v460_v2 = vpop.xlane.xlu0 %459 }
  0xe6   : > { %v464_v3 = vmul.f32 0.0078125, %v460_v2 }
  0xe8   : > { %v466_v4 = vsub.f32 %v455_v0, %v464_v3 }
  0xe9   : > { %v462_v5 = vpop.xlane.xlu0 %461 }
  0xea   : > { %v465_v6 = vmul.f32 0.0078125, %v462_v5  ;;  %v468_v7 = vmul.f32 %v466_v4, %v466_v4 }
  0xec   : > { %v467_v8 = vsub.f32 %v456_v1, %v465_v6  ;;  %470 = vadd.xlane.f32.xlu1 %v468_v7 }
  0xee   : > { %v469_v9 = vmul.f32 %v467_v8, %v467_v8 }
  0xf0   : > { %472 = vadd.xlane.f32.xlu1 %v469_v9 }
 0x175   : > { %v471_v10 = vpop.xlane.xlu1 %470 }
 0x176   : > { %v474_v11 = vmul.f32 0.0078125, %v471_v10 }
 0x178   : > { %v476_v12 = vadd.f32 1e-12, %v474_v11 }
 0x179   : > { %v473_v13 = vpop.xlane.xlu1 %472 }
 0x17a   : > { %2308 = vrsqrt.f32 %v476_v12  ;;  %v475_v14 = vmul.f32 0.0078125, %v473_v13 }
 0x17c   : > { %v477_v15 = vadd.f32 1e-12, %v475_v14 }
 0x17e   : > { %2310 = vrsqrt.f32 %v477_v15 }
 0x187   : > { %v2309_v16 = vpop.eup %2308 }
 0x188   : > { %v480_v18 = vmul.f32 %v2309_v16, %v466_v4 }
 0x18a   : > { %v488_v20 = vmul.f32 %v1966_v17, %v480_v18 }
 0x18b   : > { %v2311_v21 = vpop.eup %2310 }
 0x18c   : > { %v496_v22 = vadd.f32 %v1967_v19, %v488_v20  ;;  %v481_v23 = vmul.f32 %v2311_v21, %v467_v8 }
 0x18e   : > { %498 = vst [vmem:[#allocation2] sm:$0xff] %v496_v22  ;;  %v489_v24 = vmul.f32 %v1966_v17, %v481_v23 }
 0x190   : > { %v497_v25 = vadd.f32 %v1967_v19, %v489_v24 }
 0x192   : > { %499 = vst [vmem:[#allocation2 + $0x8] sm:$0xff] %v497_v25 }
 0x193 PF: > { %v2312_v26 = vld [vmem:[%s2767_s13 + $0x154] ss:$24 sps:$4 sm:$0xff]   ;;  %v2314_v27 = vld [vmem:[%s2767_s13 + $0x150] ss:$24 sps:$4 sm:$0xff]   ;;  %v2572_v28 = vmov 0   ;;  %v2573_v29 = vmov 0.0   ;;  %v537_v55 = vlaneseq }
 0x194   : > { %712 = vmatprep.mubr.bf16.mxu0 %v2572_v28  ;;  %2135 = vmatprep.subr.bf16.mxu1 %v2573_v29  ;;  %v2315_v30 = vld [vmem:[%s2767_s13 + $0x124] ss:$24 sps:$4 sm:$0xff]   ;;  %v2317_v31 = vld [vmem:[%s2767_s13 + $0x120] ss:$24 sps:$4 sm:$0xff]   ;;  %v2318_v32 = vld [vmem:[%s2767_s13 + $0xf4] ss:$24 sps:$4 sm:$0xff]  }
 0x195   : > { %680 = vmatprep.subr.bf16.mxu0 %v2312_v26  ;;  %v2320_v33 = vld [vmem:[%s2767_s13 + $0xf0] ss:$24 sps:$4 sm:$0xff]   ;;  %v2321_v34 = vld [vmem:[%s2767_s13 + $0xc4] ss:$24 sps:$4 sm:$0xff]   ;;  %v2323_v35 = vld [vmem:[%s2767_s13 + $0xc0] ss:$24 sps:$4 sm:$0xff]  }
 0x196   : > { %681 = vmatpush1.bf16.msra.mxu0 %v2314_v27  ;;  %v2324_v36 = vld [vmem:[%s2767_s13 + $0x94] ss:$24 sps:$4 sm:$0xff]   ;;  %v2336_v37 = vld [vmem:[%s2767_s13 + $0x158] ss:$24 sps:$4 sm:$0xff]   ;;  %v2337_v38 = vld [vmem:[%s2767_s13 + $0x128] ss:$24 sps:$4 sm:$0xff]  }
 0x197   : > { %682 = vmatprep.subr.bf16.mxu0 %v2315_v30  ;;  %2136 = vmatpush3.bf16.msra.mxu1 %v2336_v37  ;;  %v2326_v39 = vld [vmem:[%s2767_s13 + $0x90] ss:$24 sps:$4 sm:$0xff]   ;;  %v2327_v40 = vld [vmem:[%s2767_s13 + $0x64] ss:$24 sps:$4 sm:$0xff]   ;;  %v2329_v41 = vld [vmem:[%s2767_s13 + $0x60] ss:$24 sps:$4 sm:$0xff]  }
 0x198   : > { %2137 = vmatprep.subr.bf16.mxu1 %v2573_v29  ;;  %v2330_v42 = vld [vmem:[%s2767_s13 + $0x34] ss:$24 sps:$4 sm:$0xff]   ;;  %v2338_v43 = vld [vmem:[%s2767_s13 + $0xf8] ss:$24 sps:$4 sm:$0xff]   ;;  %v2339_v44 = vld [vmem:[%s2767_s13 + $0xc8] ss:$24 sps:$4 sm:$0xff]  }
 0x199   : > { %v2332_v45 = vld [vmem:[%s2767_s13 + $0x30] ss:$24 sps:$4 sm:$0xff]   ;;  %v2333_v46 = vld [vmem:[%s2767_s13 + $0x4] ss:$24 sps:$4 sm:$0xff]   ;;  %v2335_v48 = vld [vmem:[%s2767_s13] ss:$24 sps:$4 sm:$0xff]  }
 0x19a   : > { %683 = vmatpush1.bf16.msra.mxu0 %v2317_v31  ;;  %v2340_v47 = vld [vmem:[%s2767_s13 + $0x98] ss:$24 sps:$4 sm:$0xff]   ;;  %v2341_v51 = vld [vmem:[%s2767_s13 + $0x68] ss:$24 sps:$4 sm:$0xff]   ;;  %vm2574_vm0 = vmmov 0   ;;  %v2846_v56 = vshrl.u32 %v537_v55, 7 }
 0x19b   : > { %684 = vmatprep.subr.bf16.mxu0 %v2318_v32  ;;  %2138 = vmatpush3.bf16.msra.mxu1 %v2337_v38  ;;  %v2825_v49 = vld [vmem:[#allocation2] sm:$0xff]  ;;  %v2827_v50 = vld [vmem:[#allocation2 + $0x8] sm:$0xff]  ;;  %v2343_v54 = vld [vmem:[%s2767_s13 + $0x8] ss:$24 sps:$4 sm:$0xff]   ;;  %vm788_vm1 = vcmask 523264   ;;  %vm836_vm2 = vcmask 130048  }
 0x19c   : > { %2139 = vmatprep.subr.bf16.mxu1 %v2573_v29  ;;  %v502_v52 = vpack.c.bf16 %v2827_v50, %v2825_v49  ;;  %v2342_v53 = vld [vmem:[%s2767_s13 + $0x38] ss:$24 sps:$4 sm:$0xff]   ;;  %2151 = vmatprep.mubr.msk.bf16.mxu1 %vm2574_vm0, %v2573_v29  ;;  %v543_v57 = vsub.s32 1, %v2846_v56  ;;  %v539_v61 = vsub.s32 0, %v2846_v56  ;;  %v547_v11 = vsub.s32 2, %v2846_v56  ;;  %s2575_s29 = smov 64  }
 0x19d   : > { %v535_v59 = vld [vmem:[%s2784_s12] sm:$0x7]  ;;  %v2874_v24 = vld [vmem:[%s3054_s1 + $0x8] sm:$0xff]  ;;  %p2044_p1 = scmp.ne.s32.totalorder %s2658_s21, 1 }
 0x19e   : > { %685 = vmatpush1.bf16.msra.mxu0 %v2320_v33  ;;  %v544_v62 = vrot.slane %v535_v59, %v543_v57  ;;  %v540_v1 = vrot.slane %v535_v59, %v539_v61  ;;  %v548_v12 = vrot.slane %v535_v59, %v547_v11  ;;  %v2868_v20 = vld [vmem:[%s3054_s1] sm:$0xff]  ;;  %v2347_v59 = vld [vmem:[%s2767_s13 + $0xc] ss:$24 sps:$4 sm:$0xff]  }
 0x19f   : > { %686 = vmatprep.subr.bf16.mxu0 %v2321_v34  ;;  %2140 = vmatpush3.bf16.msra.mxu1 %v2338_v43  ;;  %v2345_v43 = vld [vmem:[%s2767_s13 + $0x6c] ss:$24 sps:$4 sm:$0xff]  }
 0x1a0   : > { %2141 = vmatprep.subr.bf16.mxu1 %v2573_v29 }
 0x1a2   : > { %687 = vmatpush1.bf16.msra.mxu0 %v2323_v35 }
 0x1a3   : > { %688 = vmatprep.subr.bf16.mxu0 %v2324_v36  ;;  %2142 = vmatpush3.bf16.msra.mxu1 %v2339_v44 }
 0x1a4   : > { %2143 = vmatprep.subr.bf16.mxu1 %v2573_v29 }
 0x1a6   : > { %689 = vmatpush1.bf16.msra.mxu0 %v2326_v39 }
 0x1a7   : > { %690 = vmatprep.subr.bf16.mxu0 %v2327_v40  ;;  %2144 = vmatpush3.bf16.msra.mxu1 %v2340_v47 }
 0x1a8   : > { %2145 = vmatprep.subr.bf16.mxu1 %v2573_v29 }
 0x1aa   : > { %691 = vmatpush1.bf16.msra.mxu0 %v2329_v41 }
 0x1ab   : > { %692 = vmatprep.subr.bf16.mxu0 %v2330_v42  ;;  %2146 = vmatpush3.bf16.msra.mxu1 %v2341_v51  ;;  %v2344_v42 = vld [vmem:[%s2767_s13 + $0x9c] ss:$24 sps:$4 sm:$0xff]  }
 0x1ac   : > { %2147 = vmatprep.subr.bf16.mxu1 %v2573_v29 }
 0x1ae   : > { %693 = vmatpush1.bf16.msra.mxu0 %v2332_v45 }
 0x1af   : > { %694 = vmatprep.subr.bf16.mxu0 %v2333_v46  ;;  %2148 = vmatpush3.bf16.msra.mxu1 %v2342_v53 }
 0x1b0   : > { %2149 = vmatprep.subr.bf16.mxu1 %v2573_v29 }
 0x1b2   : > { %695 = vmatpush1.bf16.msra.mxu0 %v2335_v48 }
 0x1b3   : > { %2167 = vmatprep.subr.bf16.mxu0 %v2573_v29  ;;  %2150 = vmatpush3.bf16.msra.mxu1 %v2343_v54 }
 0x1b4   : > { %2155 = vmatprep.subr.bf16.mxu1 %v2573_v29 }
 0x1b5   : > { %713 = vmatmul.mubr.bf16.vlgmr.msra.gmra.mxu0 %v502_v52 }
 0x1b6   : > { %2175 = vmatprep.mubr.msk.bf16.mxu0 %vm2574_vm0, %v2573_v29  ;;  %2152 = vmatmul.mubr.bf16.vlgmr.msra.gmra.mxu1 %v502_v52 }
 0x1b7   : > { %2157 = vmatprep.mubr.msk.bf16.mxu1 %vm2574_vm0, %v2573_v29  ;;  %2168 = vmatpush3.bf16.msra.mxu0 %v2344_v42 }
 0x1b8   : > { %2169 = vmatprep.subr.bf16.mxu0 %v2573_v29 }
 0x1bb   : > { %2170 = vmatpush3.bf16.msra.mxu0 %v2345_v43  ;;  %v1999_v43 = vld [vmem:[%s2784_s12 + $0x3] ss:$0 sm:$0xff] }
 0x1bc   : > { %2171 = vmatprep.subr.bf16.mxu0 %v2573_v29 }
 0x275   : > { %v714_v58 = vpop.f32.mrf.mxu0 }
 0x276   : > { %v715_v6 = vadd.f32 %v714_v58, %v540_v1  ;;  %v757_v13 = vpop.f32.mrf.mxu1  ;;  %v2346_v58 = vld [vmem:[%s2767_s13 + $0x3c] ss:$24 sps:$4 sm:$0xff]  }
 0x277   : > { %v716_v60 = vpop.f32.mrf.mxu0  ;;  %v758_v15 = vadd.f32 %v757_v13, %v548_v12  ;;  %2172 = vmatpush3.bf16.msra.mxu0 %v2346_v58 }
 0x278   : > { %v717_v2 = vadd.f32 %v716_v60, %v544_v62  ;;  %v764_v9 = vmul.f32 0.125, %v715_v6  ;;  %v2153_v14 = vpop.f32.mrf.mxu1  ;;  %2173 = vmatprep.subr.bf16.mxu0 %v2573_v29 }
 0x279   : > { %v718_v63 = vpop.f32.mrf.mxu0 }
 0x27a   : > { %v719_v4 = vadd.f32 %v718_v63, %v540_v1  ;;  %v760_v16 = vpop.f32.mrf.mxu1 }
 0x27b   : > { %v720_v0 = vpop.f32.mrf.mxu0  ;;  %v761_v17 = vadd.f32 %v760_v16, %v548_v12  ;;  %2174 = vmatpush3.bf16.msra.mxu0 %v2347_v59 }
 0x27c   : > { %v721_v3 = vadd.f32 %v720_v0, %v544_v62  ;;  %v765_v8 = vmul.f32 0.125, %v719_v4  ;;  %v2154_v18 = vpop.f32.mrf.mxu1  ;;  %2191 = vmatprep.subr.bf16.mxu0 %v2573_v29 }
 0x27d   : > { %v2861_v19 = vpack.c.bf16 %v761_v17, %v758_v15 }
 0x27e   : > { %v767_v5 = vpack.c.bf16 %v721_v3, %v717_v2  ;;  %v766_v10 = vpack.c.bf16 %v765_v8, %v764_v9 }
 0x280   : > { %v793_v7 = vsel %vm788_vm1, %v767_v5, 0 }
 0x281   : > { %2156 = vmatpush3.bf16.xpose.msra.mxu1 %v793_v7 }
 0x282   : > { %2161 = vmatprep.subr.bf16.mxu1 %v2573_v29 }
 0x288   : > { %2158 = vmatmul.mubr.msk.bf16.vlgmr.msra.gmra.mxu1 %vm788_vm1, %v766_v10 }
 0x289   : > { %2163 = vmatprep.mubr.msk.bf16.mxu1 %vm2574_vm0, %v2573_v29  ;;  %2162 = vmatpush3.bf16.msra.mxu1 %v2861_v19 }
 0x28a   : > { %2179 = vmatprep.subr.bf16.mxu1 %v2573_v29 }
 0x348   : > { %v829_v21 = vpop.f32.mrf.mxu1 }
 0x349   : > { %v830_v22 = vadd.f32 %v829_v21, %v2868_v20 }
 0x34a   : > { %v2159_v23 = vpop.f32.mrf.mxu1 }
 0x34b   : > { %v837_v25 = vsel %vm836_vm2, %v830_v22, -inf  ;;  %v2348_v23 = vld [vmem:[%s2767_s13 + $0x15c] ss:$24 sps:$4 sm:$0xff]  }
 0x34c   : > { %838 = vmax.xlane.f32.xlu0 %v837_v25  ;;  %v832_v26 = vpop.f32.mrf.mxu1  ;;  %v2349_v25 = vld [vmem:[%s2767_s13 + $0x12c] ss:$24 sps:$4 sm:$0xff]  }
 0x34d   : > { %v833_v27 = vadd.f32 %v832_v26, %v2874_v24 }
 0x34e   : > { %v2160_v30 = vpop.f32.mrf.mxu1 }
 0x34f   : > { %v840_v31 = vsel %vm836_vm2, %v833_v27, -inf }
 0x350   : > { %841 = vmax.xlane.f32.xlu0 %v840_v31 }
 0x366   : > { %985 = vrot.lane.b32.xlu0 %v767_v5, %s2575_s29 }
 0x3d5   : > { %v839_v32 = vpop.xlane.xlu0 %838 }
 0x3d6   : > { %v843_v33 = vsub.f32 %v830_v22, %v839_v32 }
 0x3d8   : > { %v845_v34 = vmul.f32 1.442695, %v843_v33 }
 0x3d9   : > { %v842_v35 = vpop.xlane.xlu0 %841 }
 0x3da   : > { %2392 = vpow2.f32 %v845_v34  ;;  %v844_v36 = vsub.f32 %v833_v27, %v842_v35 }
 0x3dc   : > { %v847_v37 = vmul.f32 1.442695, %v844_v36  ;;  %v2350_v36 = vld [vmem:[%s2767_s13 + $0xfc] ss:$24 sps:$4 sm:$0xff]  }
 0x3dd   : > { %v986_v52 = vpop.permute.xlu0 %985 }
 0x3de   : > { %2394 = vpow2.f32 %v847_v37  ;;  %v991_v54 = vsel %vm788_vm1, %v986_v52, 0  ;;  %v2351_v37 = vld [vmem:[%s2767_s13 + $0xcc] ss:$24 sps:$4 sm:$0xff]  }
 0x3e7   : > { %v2393_v38 = vpop.eup %2392 }
 0x3e8   : > { %v849_v39 = vsel %vm836_vm2, %v2393_v38, 0.0 }
 0x3e9   : > { %850 = vadd.xlane.f32.xlu1 %v849_v39 }
 0x3eb   : > { %v2395_v40 = vpop.eup %2394 }
 0x3ec   : > { %v852_v41 = vsel %vm836_vm2, %v2395_v40, 0.0 }
 0x3ed   : > { %853 = vadd.xlane.f32.xlu1 %v852_v41 }
 0x3fe   : > { %982 = vrot.lane.b32.xlu1 %v766_v10, %s2575_s29 }
 0x472   : > { %v851_v44 = vpop.xlane.xlu1 %850 }
 0x473   : > { %2396 = vrcp.f32 %v851_v44 }
 0x476   : > { %v854_v45 = vpop.xlane.xlu1 %853 }
 0x477   : > { %2398 = vrcp.f32 %v854_v45 }
 0x47a   : > { %v983_v55 = vpop.permute.xlu1 %982 }
 0x480   : > { %v2397_v46 = vpop.eup %2396 }
 0x481   : > { %v857_v48 = vmul.f32 %v2397_v46, %v2393_v38 }
 0x484   : > { %v2399_v47 = vpop.eup %2398 }
 0x485   : > { %v858_v51 = vmul.f32 %v2399_v47, %v2395_v40 }
 0x487   : > { %v859_v53 = vpack.c.bf16 %v858_v51, %v857_v48 }
 0x489   : > { %2164 = vmatmul.mubr.msk.bf16.vlgmr.msra.gmra.mxu1 %vm836_vm2, %v859_v53 }
 0x48a   : > { %2180 = vmatpush3.bf16.xpose.msra.mxu1 %v991_v54  ;;  %2181 = vmatprep.mubr.msk.bf16.mxu1 %vm2574_vm0, %v2573_v29  ;;  %v2352_v54 = vld [vmem:[%s2767_s13 + $0x160] ss:$24 sps:$4 sm:$0xff]  }
 0x48b   : > { %2185 = vmatprep.subr.bf16.mxu1 %v2573_v29 }
 0x491   : > { %2182 = vmatmul.mubr.msk.bf16.vlgmr.msra.gmra.mxu1 %vm788_vm1, %v983_v55  ;;  %v2354_v55 = vld [vmem:[%s2767_s13 + $0x164] ss:$24 sps:$4 sm:$0xff]  }
 0x492   : > { %2187 = vmatprep.mubr.msk.bf16.mxu1 %vm2574_vm0, %v2573_v29 }
 0x549   : > { %v897_v60 = vpop.f32.mrf.mxu1 }
 0x54b   : > { %v2165_v62 = vpop.f32.mrf.mxu1 }
 0x54d   : > { %v900_v63 = vpop.f32.mrf.mxu1 }
 0x54e   : > { %v904_v0 = vpack.c.bf16 %v900_v63, %v897_v60 }
 0x54f   : > { %v2166_v1 = vpop.f32.mrf.mxu1 }
 0x550   : > { %2176 = vmatmul.mubr.msk.bf16.vlgmr.msra.gmra.mxu0 %vm788_vm1, %v904_v0  ;;  %v2357_v1 = vld [vmem:[%s2767_s13 + $0x134] ss:$24 sps:$4 sm:$0xff]  }
 0x551   : > { %v1027_v2 = vpop.f32.mrf.mxu1  ;;  %2199 = vmatprep.mubr.msk.bf16.mxu0 %vm2574_vm0, %v2573_v29  ;;  %2192 = vmatpush3.bf16.msra.mxu0 %v2348_v23 }
 0x552   : > { %v1028_v3 = vadd.f32 %v1027_v2, %v2868_v20  ;;  %2193 = vmatprep.subr.bf16.mxu0 %v2573_v29  ;;  %v2355_v2 = vld [vmem:[%s2767_s13 + $0x130] ss:$24 sps:$4 sm:$0xff]  }
 0x553   : > { %v2183_v4 = vpop.f32.mrf.mxu1 }
 0x554   : > { %v1034_v5 = vsel %vm836_vm2, %v1028_v3, -inf  ;;  %v2358_v4 = vld [vmem:[%s2767_s13 + $0x100] ss:$24 sps:$4 sm:$0xff]  }
 0x555   : > { %1035 = vmax.xlane.f32.xlu1 %v1034_v5  ;;  %v1030_v6 = vpop.f32.mrf.mxu1  ;;  %2194 = vmatpush3.bf16.msra.mxu0 %v2349_v25  ;;  %v2361_v5 = vld [vmem:[%s2767_s13 + $0xd0] ss:$24 sps:$4 sm:$0xff]  }
 0x556   : > { %v1031_v7 = vadd.f32 %v1030_v6, %v2874_v24  ;;  %2195 = vmatprep.subr.bf16.mxu0 %v2573_v29  ;;  %v2363_v6 = vld [vmem:[%s2767_s13 + $0xd4] ss:$24 sps:$4 sm:$0xff]  }
 0x557   : > { %v2184_v8 = vpop.f32.mrf.mxu1 }
 0x558   : > { %v1037_v9 = vsel %vm836_vm2, %v1031_v7, -inf  ;;  %v2364_v8 = vld [vmem:[%s2767_s13 + $0xa0] ss:$24 sps:$4 sm:$0xff]  }
 0x559   : > { %1038 = vmax.xlane.f32.xlu0 %v1037_v9  ;;  %2196 = vmatpush3.bf16.msra.mxu0 %v2350_v36  ;;  %v2369_v9 = vld [vmem:[%s2767_s13 + $0x74] ss:$24 sps:$4 sm:$0xff]  }
 0x55a   : > { %2197 = vmatprep.subr.bf16.mxu0 %v2573_v29  ;;  %v2378_v36 = vld [vmem:[%s2773_s27 + $0x70] sm:$0xff]  }
 0x55d   : > { %2198 = vmatpush3.bf16.msra.mxu0 %v2351_v37  ;;  %v2379_v37 = vld [vmem:[%s2773_s27 + $0x30] sm:$0xff]  }
 0x5de   : > { %v1036_v10 = vpop.xlane.xlu1 %1035 }
 0x5df   : > { %v1040_v11 = vsub.f32 %v1028_v3, %v1036_v10  ;;  %v2360_v3 = vld [vmem:[%s2767_s13 + $0x104] ss:$24 sps:$4 sm:$0xff]   ;;  %v2367_v10 = vld [vmem:[%s2767_s13 + $0x70] ss:$24 sps:$4 sm:$0xff]  }
 0x5e1   : > { %v1042_v12 = vmul.f32 1.442695, %v1040_v11  ;;  %v2372_v11 = vld [vmem:[%s2767_s13 + $0x44] ss:$24 sps:$4 sm:$0xff]  }
 0x5e2   : > { %v1039_v13 = vpop.xlane.xlu0 %1038 }
 0x5e3   : > { %2400 = vpow2.f32 %v1042_v12  ;;  %v1041_v14 = vsub.f32 %v1031_v7, %v1039_v13  ;;  %v2366_v7 = vld [vmem:[%s2767_s13 + $0xa4] ss:$24 sps:$4 sm:$0xff]   ;;  %v2370_v12 = vld [vmem:[%s2767_s13 + $0x40] ss:$24 sps:$4 sm:$0xff]   ;;  %v2375_v13 = vld [vmem:[%s2767_s13 + $0x14] ss:$24 sps:$4 sm:$0xff]  }
 0x5e5   : > { %v1044_v15 = vmul.f32 1.442695, %v1041_v14  ;;  %v2373_v14 = vld [vmem:[%s2767_s13 + $0x10] ss:$24 sps:$4 sm:$0xff]  }
 0x5e7   : > { %2402 = vpow2.f32 %v1044_v15 }
 0x5f0   : > { %v2401_v16 = vpop.eup %2400 }
 0x5f1   : > { %v1046_v17 = vsel %vm836_vm2, %v2401_v16, 0.0 }
 0x5f2   : > { %1047 = vadd.xlane.f32.xlu0 %v1046_v17 }
 0x5f4   : > { %v2403_v18 = vpop.eup %2402 }
 0x5f5   : > { %v1049_v20 = vsel %vm836_vm2, %v2403_v18, 0.0 }
 0x5f6   : > { %1050 = vadd.xlane.f32.xlu1 %v1049_v20 }
 0x608   : > { %1058 = vrot.lane.b32.xlu0 %v2861_v19, %s2575_s29 }
 0x610   : > { %v966_v21 = vpop.f32.mrf.mxu0 }
 0x611   : > { %v979_v44 = vadd.f32 %v1999_v43, %v966_v21 }
 0x612   : > { %v2177_v22 = vpop.f32.mrf.mxu0 }
 0x614   : > { %v969_v24 = vpop.f32.mrf.mxu0 }
 0x615   : > { %v980_v47 = vadd.f32 %v1999_v43, %v969_v24  ;;  %v2007_v24 = vld [vmem:[%s2784_s12 + $0x4] ss:$0 sm:$0xff]  ;;  %v2385_v43 = vld [vmem:[%s2773_s27 + $0x18] sm:$0xff]  }
 0x616   : > { %v2178_v26 = vpop.f32.mrf.mxu0 }
 0x67b   : > { %v1048_v27 = vpop.xlane.xlu0 %1047 }
 0x67c   : > { %2404 = vrcp.f32 %v1048_v27 }
 0x67f   : > { %v1051_v30 = vpop.xlane.xlu1 %1050  ;;  %v1059_v31 = vpop.permute.xlu0 %1058 }
 0x680   : > { %2406 = vrcp.f32 %v1051_v30  ;;  %2186 = vmatpush3.bf16.msra.mxu1 %v1059_v31  ;;  %v2008_v30 = vld [vmem:[%s2784_s12 + $0x5] ss:$0 sm:$0xff] }
 0x681   : > { %1328 = vmatprep.subr.bf16.mxu1 %v2354_v55 }
 0x689   : > { %v2405_v19 = vpop.eup %2404 }
 0x68a   : > { %v1054_v33 = vmul.f32 %v2405_v19, %v2401_v16 }
 0x68d   : > { %v2407_v32 = vpop.eup %2406 }
 0x68e   : > { %v1055_v34 = vmul.f32 %v2407_v32, %v2403_v18 }
 0x690   : > { %v1056_v35 = vpack.c.bf16 %v1055_v34, %v1054_v33  ;;  %v2376_v34 = vld [vmem:[%s2773_s27 + $0x78] sm:$0xff]  }
 0x691   : > { %2095 = vmatprep.subr.bf16.mxu0 %v2376_v34 }
 0x692   : > { %2188 = vmatmul.mubr.msk.bf16.vlgmr.msra.gmra.mxu1 %vm836_vm2, %v1056_v35  ;;  %v2377_v35 = vld [vmem:[%s2773_s27 + $0x38] sm:$0xff]  }
 0x693   : > { %1360 = vmatprep.mubr.bf16.mxu1 %v2572_v28  ;;  %1329 = vmatpush1.bf16.msra.mxu1 %v2352_v54 }
 0x694   : > { %1330 = vmatprep.subr.bf16.mxu1 %v2357_v1 }
 0x697   : > { %1331 = vmatpush1.bf16.msra.mxu1 %v2355_v2 }
 0x698   : > { %1332 = vmatprep.subr.bf16.mxu1 %v2360_v3 }
 0x69b   : > { %1333 = vmatpush1.bf16.msra.mxu1 %v2358_v4 }
 0x69c   : > { %1334 = vmatprep.subr.bf16.mxu1 %v2363_v6 }
 0x69f   : > { %1335 = vmatpush1.bf16.msra.mxu1 %v2361_v5 }
 0x6a0   : > { %1336 = vmatprep.subr.bf16.mxu1 %v2366_v7 }
 0x6a3   : > { %1337 = vmatpush1.bf16.msra.mxu1 %v2364_v8 }
 0x6a4   : > { %1338 = vmatprep.subr.bf16.mxu1 %v2369_v9 }
 0x6a7   : > { %1339 = vmatpush1.bf16.msra.mxu1 %v2367_v10 }
 0x6a8   : > { %1340 = vmatprep.subr.bf16.mxu1 %v2372_v11 }
 0x6ab   : > { %1341 = vmatpush1.bf16.msra.mxu1 %v2370_v12 }
 0x6ac   : > { %1342 = vmatprep.subr.bf16.mxu1 %v2375_v13 }
 0x6af   : > { %1343 = vmatpush1.bf16.msra.mxu1 %v2373_v14 }
 0x752   : > { %v1098_v38 = vpop.f32.mrf.mxu1 }
 0x754   : > { %v2189_v39 = vpop.f32.mrf.mxu1 }
 0x755   : > { %v2381_v39 = vld [vmem:[%s2773_s27 + $0x28] sm:$0xff]  }
 0x756   : > { %v1101_v40 = vpop.f32.mrf.mxu1 }
 0x757   : > { %v1105_v41 = vpack.c.bf16 %v1101_v40, %v1098_v38  ;;  %v2380_v38 = vld [vmem:[%s2773_s27 + $0x68] sm:$0xff]   ;;  %v2382_v40 = vld [vmem:[%s2773_s27 + $0x60] sm:$0xff]  }
 0x758   : > { %v2190_v42 = vpop.f32.mrf.mxu1 }
 0x759   : > { %2200 = vmatmul.mubr.msk.bf16.vlgmr.msra.gmra.mxu0 %vm788_vm1, %v1105_v41  ;;  %v2383_v41 = vld [vmem:[%s2773_s27 + $0x20] sm:$0xff]   ;;  %v2384_v42 = vld [vmem:[%s2773_s27 + $0x58] sm:$0xff]  }
 0x75a   : > { %2096 = vmatpush3.bf16.msra.mxu0 %v2377_v35 }
 0x75b   : > { %2097 = vmatprep.subr.bf16.mxu0 %v2378_v36 }
 0x75e   : > { %2098 = vmatpush3.bf16.msra.mxu0 %v2379_v37 }
 0x75f   : > { %2099 = vmatprep.subr.bf16.mxu0 %v2380_v38  ;;  %v2025_v38 = vld [vmem:[%s2784_s12 + $0x8] ss:$0 sm:$0xff] }
 0x762   : > { %2100 = vmatpush3.bf16.msra.mxu0 %v2381_v39 }
 0x763   : > { %2101 = vmatprep.subr.bf16.mxu0 %v2382_v40 }
 0x766   : > { %2102 = vmatpush3.bf16.msra.mxu0 %v2383_v41 }
 0x767   : > { %2103 = vmatprep.subr.bf16.mxu0 %v2384_v42 }
 0x76a   : > { %2104 = vmatpush3.bf16.msra.mxu0 %v2385_v43 }
 0x819   : > { %v1167_v45 = vpop.f32.mrf.mxu0 }
 0x81a   : > { %v1174_v46 = vadd.f32 %v1167_v45, %v979_v44  ;;  %v2386_v44 = vld [vmem:[%s2773_s27 + $0x50] sm:$0xff]  }
 0x81b   : > { %v2201_v28 = vpop.f32.mrf.mxu0  ;;  %v2387_v45 = vld [vmem:[%s2773_s27 + $0x10] sm:$0xff]   ;;  %2105 = vmatprep.subr.bf16.mxu0 %v2386_v44 }
 0x81c   : > { %v1176_v48 = vadd.f32 %v1174_v46, %v2825_v49  ;;  %2106 = vmatpush3.bf16.msra.mxu0 %v2387_v45  ;;  %v2388_v46 = vld [vmem:[%s2773_s27 + $0x48] sm:$0xff]  }
 0x81d   : > { %v1170_v29 = vpop.f32.mrf.mxu0  ;;  %v2389_v28 = vld [vmem:[%s2773_s27 + $0x8] sm:$0xff]   ;;  %2107 = vmatprep.subr.bf16.mxu0 %v2388_v46 }
 0x81e   : > { %v1175_v51 = vadd.f32 %v1170_v29, %v980_v47  ;;  %1180 = vadd.xlane.f32.xlu1 %v1176_v48  ;;  %v2390_v47 = vld [vmem:[%s2773_s27 + $0x40] sm:$0xff]   ;;  %v1236_v29 = vld [vmem:[%s2784_s12 + $0x6] sm:$0x3] }
 0x81f   : > { %v2202_v52 = vpop.f32.mrf.mxu0 }
 0x820   : > { %v1177_v53 = vadd.f32 %v1175_v51, %v2827_v50  ;;  %2108 = vmatpush3.bf16.msra.mxu0 %v2389_v28  ;;  %v1241_v51 = vrot.slane %v1236_v29, %v539_v61  ;;  %v1245_v52 = vrot.slane %v1236_v29, %v543_v57 }
 0x821   : > { %2109 = vmatprep.subr.bf16.mxu0 %v2390_v47 }
 0x822   : > { %1182 = vadd.xlane.f32.xlu1 %v1177_v53 }
 0x8a7   : > { %v1181_v58 = vpop.xlane.xlu1 %1180 }
 0x8a8   : > { %v1185_v59 = vmul.f32 0.0078125, %v1181_v58 }
 0x8aa   : > { %v1187_v60 = vsub.f32 %v1176_v48, %v1185_v59  ;;  %v2391_v48 = vld [vmem:[%s2773_s27] sm:$0xff]  }
 0x8ab   : > { %v1183_v49 = vpop.xlane.xlu1 %1182  ;;  %2110 = vmatpush3.bf16.msra.mxu0 %v2391_v48 }
 0x8ac   : > { %v1186_v62 = vmul.f32 0.0078125, %v1183_v49  ;;  %v1189_v63 = vmul.f32 %v1187_v60, %v1187_v60 }
 0x8ae   : > { %v1188_v0 = vsub.f32 %v1177_v53, %v1186_v62  ;;  %1191 = vadd.xlane.f32.xlu1 %v1189_v63 }
 0x8b0   : > { %v1190_v50 = vmul.f32 %v1188_v0, %v1188_v0 }
 0x8b2   : > { %1193 = vadd.xlane.f32.xlu1 %v1190_v50 }
 0x937   : > { %v1192_v15 = vpop.xlane.xlu1 %1191 }
 0x938   : > { %v1195_v16 = vmul.f32 0.0078125, %v1192_v15 }
 0x93a   : > { %v1197_v17 = vadd.f32 1e-12, %v1195_v16 }
 0x93b   : > { %v1194_v18 = vpop.xlane.xlu1 %1193 }
 0x93c   : > { %2408 = vrsqrt.f32 %v1197_v17  ;;  %v1196_v20 = vmul.f32 0.0078125, %v1194_v18 }
 0x93e   : > { %v1198_v21 = vadd.f32 1e-12, %v1196_v20 }
 0x940   : > { %2410 = vrsqrt.f32 %v1198_v21 }
 0x949   : > { %v2409_v22 = vpop.eup %2408 }
 0x94a   : > { %v1201_v23 = vmul.f32 %v2409_v22, %v1187_v60 }
 0x94c   : > { %v1209_v27 = vmul.f32 %v2007_v24, %v1201_v23 }
 0x94d   : > { %v2411_v25 = vpop.eup %2410 }
 0x94e   : > { %v1202_v26 = vmul.f32 %v2411_v25, %v1188_v0  ;;  %v2941_v19 = vadd.f32 %v2008_v30, %v1209_v27 }
 0x950   : > { %v1210_v31 = vmul.f32 %v2007_v24, %v1202_v26 }
 0x952   : > { %v2943_v32 = vadd.f32 %v2008_v30, %v1210_v31 }
 0x954   : > { %v1219_v33 = vpack.c.bf16 %v2943_v32, %v2941_v19 }
 0x956   : > { %1361 = vmatmul.mubr.bf16.vlgmr.msra.gmra.mxu1 %v1219_v33 }
 0xa16   : > { %v1362_v53 = vpop.f32.mrf.mxu1 }
 0xa17   : > { %v1363_v54 = vadd.f32 %v1362_v53, %v1241_v51 }
 0xa18   : > { %v1364_v55 = vpop.f32.mrf.mxu1 }
 0xa19   : > { %v1371_v58 = vmul.f32 %v1363_v54, %v1363_v54  ;;  %v1365_v59 = vadd.f32 %v1364_v55, %v1245_v52 }
 0xa1a   : > { %v1366_v60 = vpop.f32.mrf.mxu1 }
 0xa1b   : > { %v1375_v49 = vmul.f32 %v1371_v58, %v1363_v54  ;;  %v1372_v62 = vmul.f32 %v1365_v59, %v1365_v59  ;;  %v1367_v63 = vadd.f32 %v1366_v60, %v1241_v51 }
 0xa1c   : > { %v1368_v0 = vpop.f32.mrf.mxu1 }
 0xa1d   : > { %v1379_v50 = vmul.f32 0.044715, %v1375_v49  ;;  %v1376_v1 = vmul.f32 %v1372_v62, %v1365_v59  ;;  %v1373_v2 = vmul.f32 %v1367_v63, %v1367_v63  ;;  %v1369_v3 = vadd.f32 %v1368_v0, %v1245_v52 }
 0xa1f   : > { %v1383_v4 = vadd.f32 %v1379_v50, %v1363_v54  ;;  %v1380_v5 = vmul.f32 0.044715, %v1376_v1  ;;  %v1377_v61 = vmul.f32 %v1373_v2, %v1367_v63  ;;  %v1374_v6 = vmul.f32 %v1369_v3, %v1369_v3  ;;  %v2043_v50 = vld [vmem:[%s2784_s12 + $0xa] ss:$0 sm:$0xff] }
 0xa21   : > { %v1387_v56 = vmul.f32 0.7978846, %v1383_v4  ;;  %v1384_v57 = vadd.f32 %v1380_v5, %v1365_v59  ;;  %v1381_v7 = vmul.f32 0.044715, %v1377_v61  ;;  %v1378_v8 = vmul.f32 %v1374_v6, %v1369_v3 }
 0xa23   : > { %v1388_v9 = vmul.f32 0.7978846, %v1384_v57  ;;  %v1385_v10 = vadd.f32 %v1381_v7, %v1367_v63  ;;  %v1382_v11 = vmul.f32 0.044715, %v1378_v8  ;;  %2412 = vtanh.f32 %v1387_v56 }
 0xa25   : > { %2414 = vtanh.f32 %v1388_v9  ;;  %v1389_v12 = vmul.f32 0.7978846, %v1385_v10  ;;  %v1386_v13 = vadd.f32 %v1382_v11, %v1369_v3 }
 0xa27   : > { %2416 = vtanh.f32 %v1389_v12  ;;  %v1390_v14 = vmul.f32 0.7978846, %v1386_v13 }
 0xa29   : > { %2418 = vtanh.f32 %v1390_v14 }
 0xa30   : > { %v2413_v15 = vpop.eup %2412 }
 0xa31   : > { %v1395_v20 = vadd.f32 1.0, %v2413_v15 }
 0xa32   : > { %v2415_v16 = vpop.eup %2414 }
 0xa33   : > { %v1396_v17 = vadd.f32 1.0, %v2415_v16  ;;  %v1399_v26 = vmul.f32 0.5, %v1395_v20 }
 0xa34   : > { %v2417_v18 = vpop.eup %2416 }
 0xa35   : > { %v1397_v21 = vadd.f32 1.0, %v2417_v18  ;;  %v1400_v25 = vmul.f32 0.5, %v1396_v17  ;;  %v1403_v34 = vmul.f32 %v1399_v26, %v1363_v54 }
 0xa36   : > { %v2419_v22 = vpop.eup %2418 }
 0xa37   : > { %v1401_v23 = vmul.f32 0.5, %v1397_v21  ;;  %v1398_v24 = vadd.f32 1.0, %v2419_v22  ;;  %v1404_v31 = vmul.f32 %v1400_v25, %v1365_v59 }
 0xa39   : > { %v1402_v27 = vmul.f32 0.5, %v1398_v24  ;;  %v1405_v30 = vmul.f32 %v1401_v23, %v1367_v63  ;;  %v2042_v63 = vld [vmem:[%s2784_s12 + $0x9] ss:$0 sm:$0xff] }
 0xa3b   : > { %v1406_v33 = vmul.f32 %v1402_v27, %v1369_v3  ;;  %v1407_v36 = vpack.c.bf16 %v1405_v30, %v1403_v34 }
 0xa3d   : > { %v1408_v35 = vpack.c.bf16 %v1406_v33, %v1404_v31 }
 0xa3f   : > { %1576 = vmatprep.mubr.bf16.mxu0 %v1408_v35 }
 0xa40   : > { %1577 = vmatmul.mubr.bf16.vlgmr.msra.gmra.mxu0 %v1407_v36 }
 0xb00   : > { %v2111_v37 = vpop.f32.mrf.mxu0 }
 0xb02   : > { %v2112_v39 = vpop.f32.mrf.mxu0 }
 0xb03   : > { %v2113_v40 = vadd.f32 %v2112_v39, %v2111_v37 }
 0xb04   : > { %v2114_v41 = vpop.f32.mrf.mxu0 }
 0xb05   : > { %v1579_v42 = vadd.f32 %v2113_v40, %v2025_v38 }
 0xb06   : > { %v2115_v43 = vpop.f32.mrf.mxu0 }
 0xb07   : > { %v2116_v44 = vadd.f32 %v2115_v43, %v2114_v41  ;;  %v1585_v45 = vadd.f32 %v1579_v42, %v2941_v19 }
 0xb09   : > { %v1582_v46 = vadd.f32 %v2116_v44, %v2025_v38  ;;  %1589 = vadd.xlane.f32.xlu1 %v1585_v45 }
 0xb0b   : > { %v1586_v28 = vadd.f32 %v1582_v46, %v2943_v32 }
 0xb0d   : > { %1591 = vadd.xlane.f32.xlu1 %v1586_v28 }
 0xb92   : > { %v1590_v47 = vpop.xlane.xlu1 %1589 }
 0xb93   : > { %v1593_v48 = vmul.f32 0.0078125, %v1590_v47 }
 0xb95   : > { %v1595_v29 = vsub.f32 %v1585_v45, %v1593_v48 }
 0xb96   : > { %v1592_v51 = vpop.xlane.xlu1 %1591 }
 0xb97   : > { %v1594_v52 = vmul.f32 0.0078125, %v1592_v51  ;;  %v1597_v53 = vmul.f32 %v1595_v29, %v1595_v29 }
 0xb99   : > { %v1596_v54 = vsub.f32 %v1586_v28, %v1594_v52  ;;  %1599 = vadd.xlane.f32.xlu0 %v1597_v53 }
 0xb9b   : > { %v1598_v55 = vmul.f32 %v1596_v54, %v1596_v54 }
 0xb9d   : > { %1601 = vadd.xlane.f32.xlu1 %v1598_v55 }
 0xc22   : > { %v1600_v58 = vpop.xlane.xlu0 %1599 }
 0xc23   : > { %v1603_v59 = vmul.f32 0.0078125, %v1600_v58 }
 0xc25   : > { %v1605_v19 = vadd.f32 1e-12, %v1603_v59 }
 0xc26   : > { %v1602_v60 = vpop.xlane.xlu1 %1601 }
 0xc27   : > { %2420 = vrsqrt.f32 %v1605_v19  ;;  %v1604_v49 = vmul.f32 0.0078125, %v1602_v60 }
 0xc29   : > { %v1606_v32 = vadd.f32 1e-12, %v1604_v49 }
 0xc2b   : > { %2422 = vrsqrt.f32 %v1606_v32 }
 0xc34   : > { %v2421_v62 = vpop.eup %2420 }
 0xc35   : > { %v1609_v0 = vmul.f32 %v2421_v62, %v1595_v29 }
 0xc37   : > { %v1617_v1 = vmul.f32 %v2042_v63, %v1609_v0 }
 0xc38   : > { %v2423_v2 = vpop.eup %2422 }
 0xc39   : > { %v1625_v3 = vadd.f32 %v2043_v50, %v1617_v1  ;;  %v1610_v4 = vmul.f32 %v2423_v2, %v1596_v54 }
 0xc3b   : > { %1627 = vst [vmem:[#allocation2] sm:$0xff] %v1625_v3  ;;  %v1618_v5 = vmul.f32 %v2042_v63, %v1610_v4  ;;  %1632 = sbr.rel (%p2044_p1) target bundleno = 3579 (0xdfb), region = 80 }
 0xc3d   : > { %v1626_v61 = vadd.f32 %v2043_v50, %v1618_v5 }
 0xc3f   : > { %1628 = vst [vmem:[#allocation2 + $0x8] sm:$0xff] %v1626_v61 }
 0xc40   : > { %v2424_v6 = vld [vmem:[%s3060_s7 + $0x38] sm:$0xff]   ;;  %v2576_v56 = vmov 0.0   ;;  %v2425_v57 = vld [vmem:[%s3060_s7 + $0x30] sm:$0xff]   ;;  %vm2577_vm3 = vmmov 0   ;;  %v2426_v7 = vld [vmem:[%s3060_s7 + $0x28] sm:$0xff]   ;;  %v1634_v15 = vrot.slane %v1626_v61, 7 }
 0xc41   : > { %2203 = vmatprep.subr.bf16.mxu0 %v2576_v56  ;;  %2223 = vmatprep.subr.bf16.mxu1 %v2576_v56  ;;  %v2432_v8 = vld [vmem:[%s3062_s9 + $0x38] sm:$0xff]   ;;  %v2427_v9 = vld [vmem:[%s3060_s7 + $0x20] sm:$0xff]   ;;  %v2433_v10 = vld [vmem:[%s3062_s9 + $0x30] sm:$0xff]   ;;  %vm1636_vm4 = vcmask 1040384  }
 0xc42   : > { %2204 = vmatpush3.bf16.msra.mxu0 %v2424_v6  ;;  %2219 = vmatprep.mubr.msk.bf16.mxu0 %vm2577_vm3, %v2576_v56  ;;  %v2428_v11 = vld [vmem:[%s3060_s7 + $0x18] sm:$0xff]   ;;  %v2434_v12 = vld [vmem:[%s3062_s9 + $0x28] sm:$0xff]   ;;  %v2429_v13 = vld [vmem:[%s3060_s7 + $0x10] sm:$0xff]   ;;  %v1637_v17 = vsel %vm1636_vm4, %v1625_v3, %v1634_v15 }
 0xc43   : > { %2205 = vmatprep.subr.bf16.mxu0 %v2576_v56  ;;  %2239 = vmatprep.mubr.msk.bf16.mxu1 %vm2577_vm3, %v2576_v56  ;;  %v2430_v14 = vld [vmem:[%s3060_s7 + $0x8] sm:$0xff]   ;;  %v2431_v16 = vld [vmem:[%s3060_s7] sm:$0xff]   ;;  %v1638_v18 = vpack.c.bf16 %v1637_v17, %v1637_v17  ;;  %v2436_v21 = vld [vmem:[%s3062_s9 + $0x18] sm:$0xff]  }
 0xc44   : > { %2224 = vmatpush3.bf16.msra.mxu1 %v2432_v8  ;;  %v2435_v20 = vld [vmem:[%s3062_s9 + $0x20] sm:$0xff]   ;;  %v2437_v22 = vld [vmem:[%s3062_s9 + $0x10] sm:$0xff]   ;;  %v2438_v23 = vld [vmem:[%s3062_s9 + $0x8] sm:$0xff]  }
 0xc45   : > { %2225 = vmatprep.subr.bf16.mxu1 %v2576_v56  ;;  %v2439_v24 = vld [vmem:[%s3062_s9] sm:$0xff]  }
 0xc46   : > { %2206 = vmatpush3.bf16.msra.mxu0 %v2425_v57  ;;  %v2045_v25 = vld [vmem:[%s3061_s8] ss:$0 sm:$0xff] }
 0xc47   : > { %2207 = vmatprep.subr.bf16.mxu0 %v2576_v56  ;;  %v2054_v36 = vld [vmem:[%s3063_s10] ss:$0 sm:$0xff] }
 0xc48   : > { %2226 = vmatpush3.bf16.msra.mxu1 %v2433_v10 }
 0xc49   : > { %2227 = vmatprep.subr.bf16.mxu1 %v2576_v56 }
 0xc4a   : > { %2208 = vmatpush3.bf16.msra.mxu0 %v2426_v7 }
 0xc4b   : > { %2209 = vmatprep.subr.bf16.mxu0 %v2576_v56 }
 0xc4c   : > { %2228 = vmatpush3.bf16.msra.mxu1 %v2434_v12 }
 0xc4d   : > { %2229 = vmatprep.subr.bf16.mxu1 %v2576_v56 }
 0xc4e   : > { %2210 = vmatpush3.bf16.msra.mxu0 %v2427_v9 }
 0xc4f   : > { %2211 = vmatprep.subr.bf16.mxu0 %v2576_v56 }
 0xc50   : > { %2230 = vmatpush3.bf16.msra.mxu1 %v2435_v20 }
 0xc51   : > { %2231 = vmatprep.subr.bf16.mxu1 %v2576_v56 }
 0xc52   : > { %2212 = vmatpush3.bf16.msra.mxu0 %v2428_v11 }
 0xc53   : > { %2213 = vmatprep.subr.bf16.mxu0 %v2576_v56 }
 0xc54   : > { %2232 = vmatpush3.bf16.msra.mxu1 %v2436_v21 }
 0xc55   : > { %2233 = vmatprep.subr.bf16.mxu1 %v2576_v56 }
 0xc56   : > { %2214 = vmatpush3.bf16.msra.mxu0 %v2429_v13 }
 0xc57   : > { %2215 = vmatprep.subr.bf16.mxu0 %v2576_v56 }
 0xc58   : > { %2234 = vmatpush3.bf16.msra.mxu1 %v2437_v22 }
 0xc59   : > { %2235 = vmatprep.subr.bf16.mxu1 %v2576_v56 }
 0xc5a   : > { %2216 = vmatpush3.bf16.msra.mxu0 %v2430_v14 }
 0xc5b   : > { %2217 = vmatprep.subr.bf16.mxu0 %v2576_v56 }
 0xc5c   : > { %2236 = vmatpush3.bf16.msra.mxu1 %v2438_v23 }
 0xc5d   : > { %2237 = vmatprep.subr.bf16.mxu1 %v2576_v56 }
 0xc5e   : > { %2218 = vmatpush3.bf16.msra.mxu0 %v2431_v16 }
 0xc60   : > { %2238 = vmatpush3.bf16.msra.mxu1 %v2439_v24 }
 0xc61   : > { %2220 = vmatmul.mubr.bf16.vlgmr.msra.gmra.mxu0 %v1638_v18 }
 0xd21   : > { %v1744_v26 = vpop.f32.mrf.mxu0 }
 0xd22   : > { %v1745_v27 = vadd.f32 %v2045_v25, %v1744_v26 }
 0xd23   : > { %v2221_v30 = vpop.f32.mrf.mxu0 }
 0xd24   : > { %2440 = vtanh.f32 %v1745_v27 }
 0xd25   : > { %v1747_v31 = vpop.f32.mrf.mxu0 }
 0xd27   : > { %v2222_v33 = vpop.f32.mrf.mxu0 }
 0xd31   : > { %v2441_v34 = vpop.eup %2440 }
 0xd32   : > { %v1751_v35 = vpack.c.bf16 %v2441_v34, %v2441_v34 }
 0xd34   : > { %2240 = vmatmul.mubr.bf16.vlgmr.msra.gmra.mxu1 %v1751_v35 }
 0xdf4   : > { %v1857_v37 = vpop.f32.mrf.mxu1 }
 0xdf5   : > { %v1858_v38 = vadd.f32 %v2054_v36, %v1857_v37 }
 0xdf6   : > { %v2241_v39 = vpop.f32.mrf.mxu1 }
 0xdf7   : > { %1863 = vst [vmem:[#allocation8] sm:$0x3] %v1858_v38 }
 0xdf8   : > { %v1860_v40 = vpop.f32.mrf.mxu1 }
 0xdfa   : > { %v2242_v41 = vpop.f32.mrf.mxu1 }
 0xdfb PF: > { %p2263_p4 = scmp.eq.s32.totalorder %s2658_s21, 1  ;;  %s2578_s14 = smov [#allocation8]  }
 0xdfc   : > { %s1871_s12 = sshll.u32 %s2578_s14, 4  ;;  %s1872_s12 = int_to_ptr.vmem [resolvable:$true] %s1871_s12 }
 0xdfd   : > { %s2498_s15 = scalar_lea.vmem %s1872_s12, 32  ;;  %p2505_p0 = scmp.lt.s32.totalorder %s1872_s12, %s1872_s12 }
 0xdfe   : > { %p2499_p6 = scmp.ne.s32.totalorder %s1872_s12, %s2498_s15  ;;  %p2506_p13 = scmp.lt.s32.totalorder %s2498_s15, %s2498_s15 }
 0xe00   : > { %p2500_p10 = pnand %p2499_p6, %p2263_p4  ;;  %p2507_p9 = por %p2506_p13, %p2505_p0 }
 0xe02   : > { %p2501_p12 = pneg %p2500_p10 }
 0xe04   : > { %p2508_p2 = pnand %p2507_p9, %p2501_p12 }
 0xe06   : > { %2511 = shalt.err (!%p2508_p2)
}
 0xe07   : > { %2252 = dma.vmem_to_hbm [thread:$0]  (%p2263_p4), %s1872_s12, 32, %s3064_s11, [#allocation5]  }
 0xe08   : > { %2547 = dma.done.wait (%p2263_p4), [#allocation5], 32  }
 0xe09   : > { %2549 = vsyncadd (%p2263_p4), [#allocation5], 4294967264 }
 0xe0a PF: > { %s3076_s16 = sld [smem:[#allocation12_spill]]  ;;  %p25_p3 = scmp.ge.s32.totalorder %s2661_s22, 4  }
 0xe0b   : > { %s3077_s19 = sld [smem:[#allocation13_spill]]  ;;  %s3078_s17 = smov %s2556_s18 }
 0xe0c   : > { %s3080_s20 = smov %s2661_s22  ;;  %27 = sbr.rel (!%p25_p3) target bundleno = 8 (0x8), region = 125 }
 0xe10   : > { %s3079_s18 = smov %s3076_s16 }
 0xe11   :  { %1884 = vsyncpa [#allocation4], 1 }
 0xe12   :  { %1886 = vsyncpa [#allocation4 + $0x1], 1 }
 0xe13   :  { %1887 = vsyncpa [#allocation7], 1 }
 0xe14   :  { %1889 = vsyncpa [#allocation7 + $0x1], 1 }
 0xe15   :  { %1890 = vsyncpa [#allocation5], 1 }
 0xe16   :  { %1892 = vsyncpa [#allocation5 + $0x1], 1 }

</bundles_post_ra>
